<compile_context>
chip_gen: v7x
topology: tpu7x:2x2x1
jax: 0.10.0
libtpu: 0.0.40
codegen_flags: <defaults>
</compile_context>

<pallas_src>
import jax
import jax.numpy as jnp
from jax.experimental import pallas as pl
from jax.experimental.pallas import tpu as pltpu

NPAD = 128            # all channel/lane dims padded to one full lane group
CK1, CS1 = 8, 4       # conv1 kernel / stride
CK2, CS2 = 4, 2       # conv2 kernel / stride
CK3, CS3 = 3, 1       # conv3 kernel / stride


def _round_up(v, m):
    return ((v + m - 1) // m) * m


# ---------------------------------------------------------------------------
# Fused kernel (one grid step = one image)
# ---------------------------------------------------------------------------
def _make_kernel(hs, ws, ho2, wo2, ho3, wo3, ngrp3):
    ntap3 = CK3 * CK3

    def kernel(p1_ref, w1_ref, b1_ref, w2_hbm, b2_ref, w3_hbm, b3_ref,
               o_ref, a1_ref, p2_ref, a2_ref, p3_ref, w2_v, w3_v, sem):
        f32 = jnp.float32

        # Kick off conv2/conv3 weight DMAs; they complete under conv1's GEMM.
        # Issued every step (redundant after the first step on a core, but
        # correct under megacore splits and hidden behind compute).
        cp2 = pltpu.make_async_copy(w2_hbm, w2_v, sem.at[0])
        cp3 = pltpu.make_async_copy(w3_hbm, w3_v, sem.at[1])
        cp2.start()
        cp3.start()

        # ---- conv1: one GEMM; output already in 2x2 space-to-depth layout ---
        # a1 row (Y*ws+X), lane (p*2+q)*32+c = conv1 feature at (2Y+p, 2X+q, c)
        a1_ref[...] = jnp.maximum(
            jnp.dot(p1_ref[...], w1_ref[...], preferred_element_type=f32)
            + b1_ref[...], 0.0)

        # Deterministically zero the patch buffers (pad rows never gathered,
        # but keep them clean — see review correctness concern).
        p2_ref[...] = jnp.zeros_like(p2_ref)
        p3_ref[...] = jnp.zeros_like(p3_ref)

        # ---- conv2 im2col: contiguous, 128-lane-aligned slab copies ---------
        # p2 row (y2*wo2+x2), lane group g=dy*2+dx  <-  a1 row ((y2+dy)*ws+x2+dx)
        for dy in range(2):
            for dx in range(2):
                g = dy * 2 + dx
                for y2 in range(ho2):
                    src = (y2 + dy) * ws + dx
                    dst = y2 * wo2
                    p2_ref[dst:dst + wo2, g * NPAD:(g + 1) * NPAD] = \
                        a1_ref[src:src + wo2, :]

        cp2.wait()
        # conv2: single long-K GEMM; output channels duplicated across lanes
        # (lanes 0:64 == lanes 64:128) to enable conv3's 2-taps-per-group pack.
        a2_ref[...] = jnp.maximum(
            jnp.dot(p2_ref[...], w2_v[...], preferred_element_type=f32)
            + b2_ref[...], 0.0)

        # ---- conv3 im2col: two taps packed per 128-lane group via select ----
        low = jax.lax.broadcasted_iota(jnp.int32, (wo3, NPAD), 1) < (NPAD // 2)
        zero_slab = jnp.zeros((wo3, NPAD), f32)
        for y3 in range(ho3):
            dst = y3 * wo3
            for g in range(ngrp3):
                ta = 2 * g
                ia, ja = divmod(ta, CK3)
                sa = (y3 + ia) * wo2 + ja
                slab_a = a2_ref[sa:sa + wo3, :]
                if ta + 1 < ntap3:
                    ib, jb = divmod(ta + 1, CK3)
                    sb = (y3 + ib) * wo2 + jb
                    slab_b = a2_ref[sb:sb + wo3, :]
                else:
                    slab_b = zero_slab
                p3_ref[dst:dst + wo3, g * NPAD:(g + 1) * NPAD] = \
                    jnp.where(low, slab_a, slab_b)

        cp3.wait()
        o_ref[...] = jnp.maximum(
            jnp.dot(p3_ref[...], w3_v[...], preferred_element_type=f32)
            + b3_ref[...], 0.0)

    return kernel


# ---------------------------------------------------------------------------
# Host wrapper: im2col / weight re-layout + pallas_call
# ---------------------------------------------------------------------------
def feature_extractor_forward(params, x_nchw):
    w1, b1 = params["w1"], params["b1"]
    w2, b2 = params["w2"], params["b2"]
    w3, b3 = params["w3"], params["b3"]
    n, c_in, h, w = x_nchw.shape
    c1, c2, c3 = w1.shape[0], w2.shape[0], w3.shape[0]

    # Layout assumptions baked into the lane packing (true for this module).
    assert CK1 == 2 * CS1 and CK2 == 2 * CS2 and CS3 == 1
    assert 4 * c1 == NPAD and 2 * c2 == NPAD and c3 <= NPAD

    ho1, wo1 = (h - CK1) // CS1 + 1, (w - CK1) // CS1 + 1
    # TODO(synk): odd conv1 output sizes would need an extra pad row/col in the
    # 2x2 space-to-depth step; not needed for the DQN/Atari shapes.
    assert ho1 % 2 == 0 and wo1 % 2 == 0, "conv1 output must be even (2x2 s2d)"
    hs, ws = ho1 // 2, wo1 // 2
    ho2, wo2 = (ho1 - CK2) // CS2 + 1, (wo1 - CK2) // CS2 + 1
    ho3, wo3 = (ho2 - CK3) // CS3 + 1, (wo2 - CK3) // CS3 + 1
    assert ho2 == hs - 1 and wo2 == ws - 1

    m1i, m2i, m3i = hs * ws, ho2 * wo2, ho3 * wo3
    m1p, m2p, m3p = _round_up(m1i, 8), _round_up(m2i, 8), _round_up(m3i, 8)
    k1c = CK1 * CK1 * c_in                 # 256 per s2d sub-position
    K1 = 4 * k1c                           # 1024
    K2 = 4 * NPAD                          # 512  (4 taps x 128 dense lanes)
    ntap3 = CK3 * CK3
    ngrp3 = (ntap3 + 1) // 2
    K3 = ngrp3 * NPAD                      # 640  (2 taps x 64 ch per group)

    # In-kernel gathers must never touch pad rows (review correctness concern).
    assert ho2 * ws + wo2 < m1i, "conv2 gather would read conv1 pad rows"
    assert (ho3 + CK3 - 2) * wo2 + (CK3 - 1) + (wo3 - 1) < m2i, \
        "conv3 gather would read conv2 pad rows"

    # ---- conv1 im2col (host): 8x8/s4 patches, then 2x2 space-to-depth ------
    x = jnp.transpose(x_nchw, (0, 2, 3, 1))                      # NHWC
    chunks = []
    for p in range(2):
        for q in range(2):
            blk = x[:, CS1 * p:CS1 * p + CS1 * ho1,
                    CS1 * q:CS1 * q + CS1 * wo1, :]
            blk = blk.reshape(n, ho1, CS1, wo1, CS1, c_in)
            blk = jnp.transpose(blk, (0, 1, 3, 2, 4, 5))
            chunks.append(blk.reshape(n, ho1, wo1, CS1 * CS1 * c_in))
    p1 = jnp.concatenate(chunks, axis=-1)                        # (n,ho1,wo1,256)
    p1 = p1.reshape(n, hs, 2, ws, 2, k1c)
    p1 = jnp.transpose(p1, (0, 1, 3, 2, 4, 5)).reshape(n, m1i, K1)
    p1 = jnp.pad(p1, ((0, 0), (0, m1p - m1i), (0, 0))).reshape(n * m1p, K1)

    # conv1 weight: block-diagonal (K1,128); block s=(p*2+q) -> lanes [s*c1,(s+1)*c1)
    w1r = w1.reshape(c1, c_in, 2, CS1, 2, CS1)                   # (co,ci,pp,a,qq,bb)
    w1mat = jnp.transpose(w1r, (2, 4, 3, 5, 1, 0)).reshape(k1c, c1)
    w1m = jnp.zeros((K1, NPAD), jnp.float32)
    for s in range(4):
        w1m = w1m.at[s * k1c:(s + 1) * k1c, s * c1:(s + 1) * c1].set(w1mat)
    b1p = jnp.tile(b1, 4).reshape(1, NPAD)

    # conv2 weight: K rows ordered (dy,dx,p,q,ci); output channels duplicated.
    w2r = w2.reshape(c2, c1, 2, 2, 2, 2)                         # (co,ci,dy,p,dx,q)
    w2mat = jnp.transpose(w2r, (2, 4, 3, 5, 1, 0)).reshape(K2, c2)
    w2m = jnp.concatenate([w2mat, w2mat], axis=1)                # (512,128)
    b2p = jnp.concatenate([b2, b2]).reshape(1, NPAD)

    # conv3 weight: K rows ordered (tap, ci); padded to 2-taps-per-group K3.
    w3mat = jnp.transpose(w3, (2, 3, 1, 0)).reshape(ntap3 * c2, c3)
    w3m = jnp.pad(w3mat, ((0, K3 - ntap3 * c2), (0, NPAD - c3)))  # (640,128)
    b3p = jnp.pad(b3, (0, NPAD - c3)).reshape(1, NPAD)

    kernel = _make_kernel(hs, ws, ho2, wo2, ho3, wo3, ngrp3)

    flops = 2 * n * (m1p * K1 + m2p * K2 + m3p * K3) * NPAD
    bytes_accessed = 4 * (p1.size + w1m.size + b1p.size + w2m.size + b2p.size
                          + w3m.size + b3p.size + n * m3p * NPAD)

    out = pl.pallas_call(
        kernel,
        out_shape=jax.ShapeDtypeStruct((n * m3p, NPAD), jnp.float32),
        grid_spec=pltpu.PrefetchScalarGridSpec(
            num_scalar_prefetch=0,
            grid=(n,),
            in_specs=[
                pl.BlockSpec((m1p, K1), lambda b: (b, 0)),      # p1 (per image)
                pl.BlockSpec((K1, NPAD), lambda b: (0, 0)),     # w1m
                pl.BlockSpec((1, NPAD), lambda b: (0, 0)),      # b1
                pl.BlockSpec(memory_space=pl.ANY),              # w2m (manual DMA)
                pl.BlockSpec((1, NPAD), lambda b: (0, 0)),      # b2
                pl.BlockSpec(memory_space=pl.ANY),              # w3m (manual DMA)
                pl.BlockSpec((1, NPAD), lambda b: (0, 0)),      # b3
            ],
            out_specs=pl.BlockSpec((m3p, NPAD), lambda b: (b, 0)),
            scratch_shapes=[
                pltpu.VMEM((m1p, NPAD), jnp.float32),           # conv1 act (s2d)
                pltpu.VMEM((m2p, K2), jnp.float32),             # conv2 patches
                pltpu.VMEM((m2p, NPAD), jnp.float32),           # conv2 act (dup ch)
                pltpu.VMEM((m3p, K3), jnp.float32),             # conv3 patches
                pltpu.VMEM((K2, NPAD), jnp.float32),            # conv2 weights (DMA dst)
                pltpu.VMEM((K3, NPAD), jnp.float32),            # conv3 weights (DMA dst)
                pltpu.SemaphoreType.DMA((2,)),
            ]),
        compiler_params=pltpu.CompilerParams(
            dimension_semantics=("parallel",)),
        cost_estimate=pl.CostEstimate(
            flops=flops, transcendentals=0, bytes_accessed=bytes_accessed),
    )(p1, w1m, b1p, w2m, b2p, w3m, b3p)

    out = out.reshape(n, m3p, NPAD)[:, :m3i, :c3].reshape(n, ho3, wo3, c3)
    return jnp.transpose(out, (0, 3, 1, 2))                      # NHWC -> NCHW


# ---------------------------------------------------------------------------
# Parameter init (PyTorch-style uniform(-1/sqrt(fan_in), 1/sqrt(fan_in)))
# ---------------------------------------------------------------------------
def init_params(key, input_channels):
    specs = [
        ("1", input_channels, 32, CK1),
        ("2", 32, 64, CK2),
        ("3", 64, 64, CK3),
    ]
    params = {}
    keys = jax.random.split(key, 2 * len(specs))
    for idx, (name, cin, cout, ks) in enumerate(specs):
        fan_in = cin * ks * ks
        bound = 1.0 / float(fan_in) ** 0.5
        params["w" + name] = jax.random.uniform(
            keys[2 * idx], (cout, cin, ks, ks), jnp.float32, -bound, bound)
        params["b" + name] = jax.random.uniform(
            keys[2 * idx + 1], (cout,), jnp.float32, -bound, bound)
    return params


# ---------------------------------------------------------------------------
# Pure-JAX reference for correctness
# ---------------------------------------------------------------------------
def ref_forward(params, x_nchw):
    x = x_nchw
    for name, s in (("1", CS1), ("2", CS2), ("3", CS3)):
        wgt, b = params["w" + name], params["b" + name]
        x = jax.lax.conv_general_dilated(
            x, wgt, window_strides=(s, s), padding="VALID",
            dimension_numbers=("NCHW", "OIHW", "NCHW"))
        x = jnp.maximum(x + b[None, :, None, None], 0.0)
    return x


if __name__ == "__main__":
    key = jax.random.PRNGKey(0)
    k_param, k_x = jax.random.split(key)

    input_channels = 4
    # 52 is the smallest "interesting" spatial size: 52 -> 12 -> 5 -> 3
    x = jax.random.normal(k_x, (2, input_channels, 52, 52), jnp.float32)
    params = init_params(k_param, input_channels)

    out = jax.jit(feature_extractor_forward)(params, x)
    out = jax.block_until_ready(out)
    assert out.shape == (2, 64, 3, 3), out.shape

    ref = jax.block_until_ready(ref_forward(params, x))
    assert jnp.allclose(out, ref, atol=1e-3, rtol=1e-3), \
        float(jnp.max(jnp.abs(out - ref)))

    print("KERNEL_OK")
</pallas_src>

<mosaic_0001>
module attributes {stable_mosaic.version = 11 : i64} {
  func.func @kernel(%arg0: i32, %arg1: memref<40x1024xf32, #tpu.memory_space<vmem>>, %arg2: memref<1024x128xf32, #tpu.memory_space<vmem>>, %arg3: memref<1x128xf32, #tpu.memory_space<vmem>>, %arg4: memref<512x128xf32, #tpu.memory_space<any>>, %arg5: memref<1x128xf32, #tpu.memory_space<vmem>>, %arg6: memref<640x128xf32, #tpu.memory_space<any>>, %arg7: memref<1x128xf32, #tpu.memory_space<vmem>>, %arg8: memref<16x128xf32, #tpu.memory_space<vmem>>, %arg9: memref<40x128xf32, #tpu.memory_space<vmem>>, %arg10: memref<32x512xf32, #tpu.memory_space<vmem>>, %arg11: memref<32x128xf32, #tpu.memory_space<vmem>>, %arg12: memref<16x640xf32, #tpu.memory_space<vmem>>, %arg13: memref<512x128xf32, #tpu.memory_space<vmem>>, %arg14: memref<640x128xf32, #tpu.memory_space<vmem>>, %arg15: memref<2x!tpu.dma_semaphore, #tpu.memory_space<semaphore_mem>>) attributes {dimension_semantics = [#tpu.dimension_semantics<parallel>], iteration_bounds = array<i64: 2>, scalar_prefetch = 0 : i64, scratch_operands = 7 : i64, tpu.core_type = #tpu.core_type<tc>, window_params = [{transform_indices = @transform_0, window_bounds = array<i64: 40, 1024>}, {pipeline_mode = #tpu.pipeline_mode<synchronous>, transform_indices = @transform_1, window_bounds = array<i64: 1024, 128>}, {pipeline_mode = #tpu.pipeline_mode<synchronous>, transform_indices = @transform_2, window_bounds = array<i64: 1, 128>}, {}, {pipeline_mode = #tpu.pipeline_mode<synchronous>, transform_indices = @transform_4, window_bounds = array<i64: 1, 128>}, {}, {pipeline_mode = #tpu.pipeline_mode<synchronous>, transform_indices = @transform_6, window_bounds = array<i64: 1, 128>}, {transform_indices = @transform_7, window_bounds = array<i64: 16, 128>}]} {
    %c0_i32 = arith.constant 0 : i32
    %0 = tpu.memref_slice %arg15[%c0_i32] : memref<2x!tpu.dma_semaphore, #tpu.memory_space<semaphore_mem>> -> memref<1x!tpu.dma_semaphore, #tpu.memory_space<semaphore_mem>>
    %1 = tpu.memref_squeeze %0 : memref<1x!tpu.dma_semaphore, #tpu.memory_space<semaphore_mem>> -> memref<!tpu.dma_semaphore, #tpu.memory_space<semaphore_mem>>
    tpu.enqueue_dma source(%arg4 : memref<512x128xf32, #tpu.memory_space<any>>) target(%arg13 : memref<512x128xf32, #tpu.memory_space<vmem>>) target_semaphore(%1 : memref<!tpu.dma_semaphore, #tpu.memory_space<semaphore_mem>>)
    %c1_i32 = arith.constant 1 : i32
    %2 = tpu.memref_slice %arg15[%c1_i32] : memref<2x!tpu.dma_semaphore, #tpu.memory_space<semaphore_mem>> -> memref<1x!tpu.dma_semaphore, #tpu.memory_space<semaphore_mem>>
    %3 = tpu.memref_squeeze %2 : memref<1x!tpu.dma_semaphore, #tpu.memory_space<semaphore_mem>> -> memref<!tpu.dma_semaphore, #tpu.memory_space<semaphore_mem>>
    tpu.enqueue_dma source(%arg6 : memref<640x128xf32, #tpu.memory_space<any>>) target(%arg14 : memref<640x128xf32, #tpu.memory_space<vmem>>) target_semaphore(%3 : memref<!tpu.dma_semaphore, #tpu.memory_space<semaphore_mem>>)
    %c0 = arith.constant 0 : index
    %c0_0 = arith.constant 0 : index
    %4 = vector.load %arg1[%c0, %c0_0] : memref<40x1024xf32, #tpu.memory_space<vmem>>, vector<40x1024xf32>
    %c0_1 = arith.constant 0 : index
    %c0_2 = arith.constant 0 : index
    %5 = vector.load %arg2[%c0_1, %c0_2] : memref<1024x128xf32, #tpu.memory_space<vmem>>, vector<1024x128xf32>
    %cst = arith.constant dense<0.000000e+00> : vector<40x128xf32>
    %6 = tpu.matmul %4, %5, %cst {dimension_numbers = #tpu.dot_dimension_numbers<[1], [0], [0], [1], [0, 0, 1, 1], [], []>} : vector<40x1024xf32>, vector<1024x128xf32>, vector<40x128xf32> -> vector<40x128xf32>
    %c0_3 = arith.constant 0 : index
    %c0_4 = arith.constant 0 : index
    %7 = vector.load %arg3[%c0_3, %c0_4] : memref<1x128xf32, #tpu.memory_space<vmem>>, vector<1x128xf32>
    %8 = vector.broadcast %7 : vector<1x128xf32> to vector<40x128xf32>
    %9 = arith.addf %6, %8 : vector<40x128xf32>
    %cst_5 = arith.constant 0.000000e+00 : f32
    %10 = vector.broadcast %cst_5 : f32 to vector<40x128xf32>
    %11 = arith.maximumf %9, %10 : vector<40x128xf32>
    %c0_6 = arith.constant 0 : index
    %c0_7 = arith.constant 0 : index
    %12 = vector.load %arg9[%c0_6, %c0_7] : memref<40x128xf32, #tpu.memory_space<vmem>>, vector<40x128xf32>
    tpu.vector_store %arg9[%c0_6, %c0_7], %11 {strides = array<i32>} : memref<40x128xf32, #tpu.memory_space<vmem>>, vector<40x128xf32>,
    %cst_8 = arith.constant 0.000000e+00 : f32
    %13 = vector.broadcast %cst_8 : f32 to vector<32x512xf32>
    %c0_9 = arith.constant 0 : index
    %c0_10 = arith.constant 0 : index
    %14 = vector.load %arg10[%c0_9, %c0_10] : memref<32x512xf32, #tpu.memory_space<vmem>>, vector<32x512xf32>
    tpu.vector_store %arg10[%c0_9, %c0_10], %13 {strides = array<i32>} : memref<32x512xf32, #tpu.memory_space<vmem>>, vector<32x512xf32>,
    %cst_11 = arith.constant 0.000000e+00 : f32
    %15 = vector.broadcast %cst_11 : f32 to vector<16x640xf32>
    %c0_12 = arith.constant 0 : index
    %c0_13 = arith.constant 0 : index
    %16 = vector.load %arg12[%c0_12, %c0_13] : memref<16x640xf32, #tpu.memory_space<vmem>>, vector<16x640xf32>
    tpu.vector_store %arg12[%c0_12, %c0_13], %15 {strides = array<i32>} : memref<16x640xf32, #tpu.memory_space<vmem>>, vector<16x640xf32>,
    %c0_14 = arith.constant 0 : index
    %c0_15 = arith.constant 0 : index
    %17 = vector.load %arg9[%c0_14, %c0_15] : memref<40x128xf32, #tpu.memory_space<vmem>>, vector<5x128xf32>
    %c0_16 = arith.constant 0 : index
    %c0_17 = arith.constant 0 : index
    %18 = vector.load %arg10[%c0_16, %c0_17] : memref<32x512xf32, #tpu.memory_space<vmem>>, vector<5x128xf32>
    tpu.vector_store %arg10[%c0_16, %c0_17], %17 {strides = array<i32>} : memref<32x512xf32, #tpu.memory_space<vmem>>, vector<5x128xf32>,
    %c6 = arith.constant 6 : index
    %c0_18 = arith.constant 0 : index
    %19 = vector.load %arg9[%c6, %c0_18] : memref<40x128xf32, #tpu.memory_space<vmem>>, vector<5x128xf32>
    %c5 = arith.constant 5 : index
    %c0_19 = arith.constant 0 : index
    %20 = vector.load %arg10[%c5, %c0_19] : memref<32x512xf32, #tpu.memory_space<vmem>>, vector<5x128xf32>
    tpu.vector_store %arg10[%c5, %c0_19], %19 {strides = array<i32>} : memref<32x512xf32, #tpu.memory_space<vmem>>, vector<5x128xf32>,
    %c12 = arith.constant 12 : index
    %c0_20 = arith.constant 0 : index
    %21 = vector.load %arg9[%c12, %c0_20] : memref<40x128xf32, #tpu.memory_space<vmem>>, vector<5x128xf32>
    %c10 = arith.constant 10 : index
    %c0_21 = arith.constant 0 : index
    %22 = vector.load %arg10[%c10, %c0_21] : memref<32x512xf32, #tpu.memory_space<vmem>>, vector<5x128xf32>
    tpu.vector_store %arg10[%c10, %c0_21], %21 {strides = array<i32>} : memref<32x512xf32, #tpu.memory_space<vmem>>, vector<5x128xf32>,
    %c18 = arith.constant 18 : index
    %c0_22 = arith.constant 0 : index
    %23 = vector.load %arg9[%c18, %c0_22] : memref<40x128xf32, #tpu.memory_space<vmem>>, vector<5x128xf32>
    %c15 = arith.constant 15 : index
    %c0_23 = arith.constant 0 : index
    %24 = vector.load %arg10[%c15, %c0_23] : memref<32x512xf32, #tpu.memory_space<vmem>>, vector<5x128xf32>
    tpu.vector_store %arg10[%c15, %c0_23], %23 {strides = array<i32>} : memref<32x512xf32, #tpu.memory_space<vmem>>, vector<5x128xf32>,
    %c24 = arith.constant 24 : index
    %c0_24 = arith.constant 0 : index
    %25 = vector.load %arg9[%c24, %c0_24] : memref<40x128xf32, #tpu.memory_space<vmem>>, vector<5x128xf32>
    %c20 = arith.constant 20 : index
    %c0_25 = arith.constant 0 : index
    %26 = vector.load %arg10[%c20, %c0_25] : memref<32x512xf32, #tpu.memory_space<vmem>>, vector<5x128xf32>
    tpu.vector_store %arg10[%c20, %c0_25], %25 {strides = array<i32>} : memref<32x512xf32, #tpu.memory_space<vmem>>, vector<5x128xf32>,
    %c1 = arith.constant 1 : index
    %c0_26 = arith.constant 0 : index
    %27 = vector.load %arg9[%c1, %c0_26] : memref<40x128xf32, #tpu.memory_space<vmem>>, vector<5x128xf32>
    %c0_27 = arith.constant 0 : index
    %c128 = arith.constant 128 : index
    %28 = vector.load %arg10[%c0_27, %c128] : memref<32x512xf32, #tpu.memory_space<vmem>>, vector<5x128xf32>
    tpu.vector_store %arg10[%c0_27, %c128], %27 {strides = array<i32>} : memref<32x512xf32, #tpu.memory_space<vmem>>, vector<5x128xf32>,
    %c7 = arith.constant 7 : index
    %c0_28 = arith.constant 0 : index
    %29 = vector.load %arg9[%c7, %c0_28] : memref<40x128xf32, #tpu.memory_space<vmem>>, vector<5x128xf32>
    %c5_29 = arith.constant 5 : index
    %c128_30 = arith.constant 128 : index
    %30 = vector.load %arg10[%c5_29, %c128_30] : memref<32x512xf32, #tpu.memory_space<vmem>>, vector<5x128xf32>
    tpu.vector_store %arg10[%c5_29, %c128_30], %29 {strides = array<i32>} : memref<32x512xf32, #tpu.memory_space<vmem>>, vector<5x128xf32>,
    %c13 = arith.constant 13 : index
    %c0_31 = arith.constant 0 : index
    %31 = vector.load %arg9[%c13, %c0_31] : memref<40x128xf32, #tpu.memory_space<vmem>>, vector<5x128xf32>
    %c10_32 = arith.constant 10 : index
    %c128_33 = arith.constant 128 : index
    %32 = vector.load %arg10[%c10_32, %c128_33] : memref<32x512xf32, #tpu.memory_space<vmem>>, vector<5x128xf32>
    tpu.vector_store %arg10[%c10_32, %c128_33], %31 {strides = array<i32>} : memref<32x512xf32, #tpu.memory_space<vmem>>, vector<5x128xf32>,
    %c19 = arith.constant 19 : index
    %c0_34 = arith.constant 0 : index
    %33 = vector.load %arg9[%c19, %c0_34] : memref<40x128xf32, #tpu.memory_space<vmem>>, vector<5x128xf32>
    %c15_35 = arith.constant 15 : index
    %c128_36 = arith.constant 128 : index
    %34 = vector.load %arg10[%c15_35, %c128_36] : memref<32x512xf32, #tpu.memory_space<vmem>>, vector<5x128xf32>
    tpu.vector_store %arg10[%c15_35, %c128_36], %33 {strides = array<i32>} : memref<32x512xf32, #tpu.memory_space<vmem>>, vector<5x128xf32>,
    %c25 = arith.constant 25 : index
    %c0_37 = arith.constant 0 : index
    %35 = vector.load %arg9[%c25, %c0_37] : memref<40x128xf32, #tpu.memory_space<vmem>>, vector<5x128xf32>
    %c20_38 = arith.constant 20 : index
    %c128_39 = arith.constant 128 : index
    %36 = vector.load %arg10[%c20_38, %c128_39] : memref<32x512xf32, #tpu.memory_space<vmem>>, vector<5x128xf32>
    tpu.vector_store %arg10[%c20_38, %c128_39], %35 {strides = array<i32>} : memref<32x512xf32, #tpu.memory_space<vmem>>, vector<5x128xf32>,
    %c6_40 = arith.constant 6 : index
    %c0_41 = arith.constant 0 : index
    %37 = vector.load %arg9[%c6_40, %c0_41] : memref<40x128xf32, #tpu.memory_space<vmem>>, vector<5x128xf32>
    %c0_42 = arith.constant 0 : index
    %c256 = arith.constant 256 : index
    %38 = vector.load %arg10[%c0_42, %c256] : memref<32x512xf32, #tpu.memory_space<vmem>>, vector<5x128xf32>
    tpu.vector_store %arg10[%c0_42, %c256], %37 {strides = array<i32>} : memref<32x512xf32, #tpu.memory_space<vmem>>, vector<5x128xf32>,
    %c12_43 = arith.constant 12 : index
    %c0_44 = arith.constant 0 : index
    %39 = vector.load %arg9[%c12_43, %c0_44] : memref<40x128xf32, #tpu.memory_space<vmem>>, vector<5x128xf32>
    %c5_45 = arith.constant 5 : index
    %c256_46 = arith.constant 256 : index
    %40 = vector.load %arg10[%c5_45, %c256_46] : memref<32x512xf32, #tpu.memory_space<vmem>>, vector<5x128xf32>
    tpu.vector_store %arg10[%c5_45, %c256_46], %39 {strides = array<i32>} : memref<32x512xf32, #tpu.memory_space<vmem>>, vector<5x128xf32>,
    %c18_47 = arith.constant 18 : index
    %c0_48 = arith.constant 0 : index
    %41 = vector.load %arg9[%c18_47, %c0_48] : memref<40x128xf32, #tpu.memory_space<vmem>>, vector<5x128xf32>
    %c10_49 = arith.constant 10 : index
    %c256_50 = arith.constant 256 : index
    %42 = vector.load %arg10[%c10_49, %c256_50] : memref<32x512xf32, #tpu.memory_space<vmem>>, vector<5x128xf32>
    tpu.vector_store %arg10[%c10_49, %c256_50], %41 {strides = array<i32>} : memref<32x512xf32, #tpu.memory_space<vmem>>, vector<5x128xf32>,
    %c24_51 = arith.constant 24 : index
    %c0_52 = arith.constant 0 : index
    %43 = vector.load %arg9[%c24_51, %c0_52] : memref<40x128xf32, #tpu.memory_space<vmem>>, vector<5x128xf32>
    %c15_53 = arith.constant 15 : index
    %c256_54 = arith.constant 256 : index
    %44 = vector.load %arg10[%c15_53, %c256_54] : memref<32x512xf32, #tpu.memory_space<vmem>>, vector<5x128xf32>
    tpu.vector_store %arg10[%c15_53, %c256_54], %43 {strides = array<i32>} : memref<32x512xf32, #tpu.memory_space<vmem>>, vector<5x128xf32>,
    %c30 = arith.constant 30 : index
    %c0_55 = arith.constant 0 : index
    %45 = vector.load %arg9[%c30, %c0_55] : memref<40x128xf32, #tpu.memory_space<vmem>>, vector<5x128xf32>
    %c20_56 = arith.constant 20 : index
    %c256_57 = arith.constant 256 : index
    %46 = vector.load %arg10[%c20_56, %c256_57] : memref<32x512xf32, #tpu.memory_space<vmem>>, vector<5x128xf32>
    tpu.vector_store %arg10[%c20_56, %c256_57], %45 {strides = array<i32>} : memref<32x512xf32, #tpu.memory_space<vmem>>, vector<5x128xf32>,
    %c7_58 = arith.constant 7 : index
    %c0_59 = arith.constant 0 : index
    %47 = vector.load %arg9[%c7_58, %c0_59] : memref<40x128xf32, #tpu.memory_space<vmem>>, vector<5x128xf32>
    %c0_60 = arith.constant 0 : index
    %c384 = arith.constant 384 : index
    %48 = vector.load %arg10[%c0_60, %c384] : memref<32x512xf32, #tpu.memory_space<vmem>>, vector<5x128xf32>
    tpu.vector_store %arg10[%c0_60, %c384], %47 {strides = array<i32>} : memref<32x512xf32, #tpu.memory_space<vmem>>, vector<5x128xf32>,
    %c13_61 = arith.constant 13 : index
    %c0_62 = arith.constant 0 : index
    %49 = vector.load %arg9[%c13_61, %c0_62] : memref<40x128xf32, #tpu.memory_space<vmem>>, vector<5x128xf32>
    %c5_63 = arith.constant 5 : index
    %c384_64 = arith.constant 384 : index
    %50 = vector.load %arg10[%c5_63, %c384_64] : memref<32x512xf32, #tpu.memory_space<vmem>>, vector<5x128xf32>
    tpu.vector_store %arg10[%c5_63, %c384_64], %49 {strides = array<i32>} : memref<32x512xf32, #tpu.memory_space<vmem>>, vector<5x128xf32>,
    %c19_65 = arith.constant 19 : index
    %c0_66 = arith.constant 0 : index
    %51 = vector.load %arg9[%c19_65, %c0_66] : memref<40x128xf32, #tpu.memory_space<vmem>>, vector<5x128xf32>
    %c10_67 = arith.constant 10 : index
    %c384_68 = arith.constant 384 : index
    %52 = vector.load %arg10[%c10_67, %c384_68] : memref<32x512xf32, #tpu.memory_space<vmem>>, vector<5x128xf32>
    tpu.vector_store %arg10[%c10_67, %c384_68], %51 {strides = array<i32>} : memref<32x512xf32, #tpu.memory_space<vmem>>, vector<5x128xf32>,
    %c25_69 = arith.constant 25 : index
    %c0_70 = arith.constant 0 : index
    %53 = vector.load %arg9[%c25_69, %c0_70] : memref<40x128xf32, #tpu.memory_space<vmem>>, vector<5x128xf32>
    %c15_71 = arith.constant 15 : index
    %c384_72 = arith.constant 384 : index
    %54 = vector.load %arg10[%c15_71, %c384_72] : memref<32x512xf32, #tpu.memory_space<vmem>>, vector<5x128xf32>
    tpu.vector_store %arg10[%c15_71, %c384_72], %53 {strides = array<i32>} : memref<32x512xf32, #tpu.memory_space<vmem>>, vector<5x128xf32>,
    %c31 = arith.constant 31 : index
    %c0_73 = arith.constant 0 : index
    %55 = vector.load %arg9[%c31, %c0_73] : memref<40x128xf32, #tpu.memory_space<vmem>>, vector<5x128xf32>
    %c20_74 = arith.constant 20 : index
    %c384_75 = arith.constant 384 : index
    %56 = vector.load %arg10[%c20_74, %c384_75] : memref<32x512xf32, #tpu.memory_space<vmem>>, vector<5x128xf32>
    tpu.vector_store %arg10[%c20_74, %c384_75], %55 {strides = array<i32>} : memref<32x512xf32, #tpu.memory_space<vmem>>, vector<5x128xf32>,
    %c0_i32_76 = arith.constant 0 : i32
    %57 = tpu.memref_slice %arg15[%c0_i32_76] : memref<2x!tpu.dma_semaphore, #tpu.memory_space<semaphore_mem>> -> memref<1x!tpu.dma_semaphore, #tpu.memory_space<semaphore_mem>>
    %58 = tpu.memref_squeeze %57 : memref<1x!tpu.dma_semaphore, #tpu.memory_space<semaphore_mem>> -> memref<!tpu.dma_semaphore, #tpu.memory_space<semaphore_mem>>
    tpu.wait_dma2 semaphore(%58 : memref<!tpu.dma_semaphore, #tpu.memory_space<semaphore_mem>>) src(%arg4 : memref<512x128xf32, #tpu.memory_space<any>>) dst(%arg13 : memref<512x128xf32, #tpu.memory_space<vmem>>)
    %c0_77 = arith.constant 0 : index
    %c0_78 = arith.constant 0 : index
    %59 = vector.load %arg10[%c0_77, %c0_78] : memref<32x512xf32, #tpu.memory_space<vmem>>, vector<32x512xf32>
    %c0_79 = arith.constant 0 : index
    %c0_80 = arith.constant 0 : index
    %60 = vector.load %arg13[%c0_79, %c0_80] : memref<512x128xf32, #tpu.memory_space<vmem>>, vector<512x128xf32>
    %cst_81 = arith.constant dense<0.000000e+00> : vector<32x128xf32>
    %61 = tpu.matmul %59, %60, %cst_81 {dimension_numbers = #tpu.dot_dimension_numbers<[1], [0], [0], [1], [0, 0, 1, 1], [], []>} : vector<32x512xf32>, vector<512x128xf32>, vector<32x128xf32> -> vector<32x128xf32>
    %c0_82 = arith.constant 0 : index
    %c0_83 = arith.constant 0 : index
    %62 = vector.load %arg5[%c0_82, %c0_83] : memref<1x128xf32, #tpu.memory_space<vmem>>, vector<1x128xf32>
    %63 = vector.broadcast %62 : vector<1x128xf32> to vector<32x128xf32>
    %64 = arith.addf %61, %63 : vector<32x128xf32>
    %cst_84 = arith.constant 0.000000e+00 : f32
    %65 = vector.broadcast %cst_84 : f32 to vector<32x128xf32>
    %66 = arith.maximumf %64, %65 : vector<32x128xf32>
    %c0_85 = arith.constant 0 : index
    %c0_86 = arith.constant 0 : index
    %67 = vector.load %arg11[%c0_85, %c0_86] : memref<32x128xf32, #tpu.memory_space<vmem>>, vector<32x128xf32>
    tpu.vector_store %arg11[%c0_85, %c0_86], %66 {strides = array<i32>} : memref<32x128xf32, #tpu.memory_space<vmem>>, vector<32x128xf32>,
    %68 = tpu.iota {dimensions = array<i32: 1>} : vector<3x128xi32>
    %c64_i32 = arith.constant 64 : i32
    %69 = vector.broadcast %c64_i32 : i32 to vector<3x128xi32>
    %70 = arith.cmpi slt, %68, %69 : vector<3x128xi32>
    %cst_87 = arith.constant 0.000000e+00 : f32
    %71 = vector.broadcast %cst_87 : f32 to vector<3x128xf32>
    %c0_88 = arith.constant 0 : index
    %c0_89 = arith.constant 0 : index
    %72 = vector.load %arg11[%c0_88, %c0_89] : memref<32x128xf32, #tpu.memory_space<vmem>>, vector<3x128xf32>
    %c1_90 = arith.constant 1 : index
    %c0_91 = arith.constant 0 : index
    %73 = vector.load %arg11[%c1_90, %c0_91] : memref<32x128xf32, #tpu.memory_space<vmem>>, vector<3x128xf32>
    %74 = arith.select %70, %72, %73 : vector<3x128xi1>, vector<3x128xf32>
    %c0_92 = arith.constant 0 : index
    %c0_93 = arith.constant 0 : index
    %75 = vector.load %arg12[%c0_92, %c0_93] : memref<16x640xf32, #tpu.memory_space<vmem>>, vector<3x128xf32>
    tpu.vector_store %arg12[%c0_92, %c0_93], %74 {strides = array<i32>} : memref<16x640xf32, #tpu.memory_space<vmem>>, vector<3x128xf32>,
    %c2 = arith.constant 2 : index
    %c0_94 = arith.constant 0 : index
    %76 = vector.load %arg11[%c2, %c0_94] : memref<32x128xf32, #tpu.memory_space<vmem>>, vector<3x128xf32>
    %c5_95 = arith.constant 5 : index
    %c0_96 = arith.constant 0 : index
    %77 = vector.load %arg11[%c5_95, %c0_96] : memref<32x128xf32, #tpu.memory_space<vmem>>, vector<3x128xf32>
    %78 = arith.select %70, %76, %77 : vector<3x128xi1>, vector<3x128xf32>
    %c0_97 = arith.constant 0 : index
    %c128_98 = arith.constant 128 : index
    %79 = vector.load %arg12[%c0_97, %c128_98] : memref<16x640xf32, #tpu.memory_space<vmem>>, vector<3x128xf32>
    tpu.vector_store %arg12[%c0_97, %c128_98], %78 {strides = array<i32>} : memref<16x640xf32, #tpu.memory_space<vmem>>, vector<3x128xf32>,
    %c6_99 = arith.constant 6 : index
    %c0_100 = arith.constant 0 : index
    %80 = vector.load %arg11[%c6_99, %c0_100] : memref<32x128xf32, #tpu.memory_space<vmem>>, vector<3x128xf32>
    %c7_101 = arith.constant 7 : index
    %c0_102 = arith.constant 0 : index
    %81 = vector.load %arg11[%c7_101, %c0_102] : memref<32x128xf32, #tpu.memory_space<vmem>>, vector<3x128xf32>
    %82 = arith.select %70, %80, %81 : vector<3x128xi1>, vector<3x128xf32>
    %c0_103 = arith.constant 0 : index
    %c256_104 = arith.constant 256 : index
    %83 = vector.load %arg12[%c0_103, %c256_104] : memref<16x640xf32, #tpu.memory_space<vmem>>, vector<3x128xf32>
    tpu.vector_store %arg12[%c0_103, %c256_104], %82 {strides = array<i32>} : memref<16x640xf32, #tpu.memory_space<vmem>>, vector<3x128xf32>,
    %c10_105 = arith.constant 10 : index
    %c0_106 = arith.constant 0 : index
    %84 = vector.load %arg11[%c10_105, %c0_106] : memref<32x128xf32, #tpu.memory_space<vmem>>, vector<3x128xf32>
    %c11 = arith.constant 11 : index
    %c0_107 = arith.constant 0 : index
    %85 = vector.load %arg11[%c11, %c0_107] : memref<32x128xf32, #tpu.memory_space<vmem>>, vector<3x128xf32>
    %86 = arith.select %70, %84, %85 : vector<3x128xi1>, vector<3x128xf32>
    %c0_108 = arith.constant 0 : index
    %c384_109 = arith.constant 384 : index
    %87 = vector.load %arg12[%c0_108, %c384_109] : memref<16x640xf32, #tpu.memory_space<vmem>>, vector<3x128xf32>
    tpu.vector_store %arg12[%c0_108, %c384_109], %86 {strides = array<i32>} : memref<16x640xf32, #tpu.memory_space<vmem>>, vector<3x128xf32>,
    %c12_110 = arith.constant 12 : index
    %c0_111 = arith.constant 0 : index
    %88 = vector.load %arg11[%c12_110, %c0_111] : memref<32x128xf32, #tpu.memory_space<vmem>>, vector<3x128xf32>
    %89 = arith.select %70, %88, %71 : vector<3x128xi1>, vector<3x128xf32>
    %c0_112 = arith.constant 0 : index
    %c512 = arith.constant 512 : index
    %90 = vector.load %arg12[%c0_112, %c512] : memref<16x640xf32, #tpu.memory_space<vmem>>, vector<3x128xf32>
    tpu.vector_store %arg12[%c0_112, %c512], %89 {strides = array<i32>} : memref<16x640xf32, #tpu.memory_space<vmem>>, vector<3x128xf32>,
    %c5_113 = arith.constant 5 : index
    %c0_114 = arith.constant 0 : index
    %91 = vector.load %arg11[%c5_113, %c0_114] : memref<32x128xf32, #tpu.memory_space<vmem>>, vector<3x128xf32>
    %c6_115 = arith.constant 6 : index
    %c0_116 = arith.constant 0 : index
    %92 = vector.load %arg11[%c6_115, %c0_116] : memref<32x128xf32, #tpu.memory_space<vmem>>, vector<3x128xf32>
    %93 = arith.select %70, %91, %92 : vector<3x128xi1>, vector<3x128xf32>
    %c3 = arith.constant 3 : index
    %c0_117 = arith.constant 0 : index
    %94 = vector.load %arg12[%c3, %c0_117] : memref<16x640xf32, #tpu.memory_space<vmem>>, vector<3x128xf32>
    tpu.vector_store %arg12[%c3, %c0_117], %93 {strides = array<i32>} : memref<16x640xf32, #tpu.memory_space<vmem>>, vector<3x128xf32>,
    %c7_118 = arith.constant 7 : index
    %c0_119 = arith.constant 0 : index
    %95 = vector.load %arg11[%c7_118, %c0_119] : memref<32x128xf32, #tpu.memory_space<vmem>>, vector<3x128xf32>
    %c10_120 = arith.constant 10 : index
    %c0_121 = arith.constant 0 : index
    %96 = vector.load %arg11[%c10_120, %c0_121] : memref<32x128xf32, #tpu.memory_space<vmem>>, vector<3x128xf32>
    %97 = arith.select %70, %95, %96 : vector<3x128xi1>, vector<3x128xf32>
    %c3_122 = arith.constant 3 : index
    %c128_123 = arith.constant 128 : index
    %98 = vector.load %arg12[%c3_122, %c128_123] : memref<16x640xf32, #tpu.memory_space<vmem>>, vector<3x128xf32>
    tpu.vector_store %arg12[%c3_122, %c128_123], %97 {strides = array<i32>} : memref<16x640xf32, #tpu.memory_space<vmem>>, vector<3x128xf32>,
    %c11_124 = arith.constant 11 : index
    %c0_125 = arith.constant 0 : index
    %99 = vector.load %arg11[%c11_124, %c0_125] : memref<32x128xf32, #tpu.memory_space<vmem>>, vector<3x128xf32>
    %c12_126 = arith.constant 12 : index
    %c0_127 = arith.constant 0 : index
    %100 = vector.load %arg11[%c12_126, %c0_127] : memref<32x128xf32, #tpu.memory_space<vmem>>, vector<3x128xf32>
    %101 = arith.select %70, %99, %100 : vector<3x128xi1>, vector<3x128xf32>
    %c3_128 = arith.constant 3 : index
    %c256_129 = arith.constant 256 : index
    %102 = vector.load %arg12[%c3_128, %c256_129] : memref<16x640xf32, #tpu.memory_space<vmem>>, vector<3x128xf32>
    tpu.vector_store %arg12[%c3_128, %c256_129], %101 {strides = array<i32>} : memref<16x640xf32, #tpu.memory_space<vmem>>, vector<3x128xf32>,
    %c15_130 = arith.constant 15 : index
    %c0_131 = arith.constant 0 : index
    %103 = vector.load %arg11[%c15_130, %c0_131] : memref<32x128xf32, #tpu.memory_space<vmem>>, vector<3x128xf32>
    %c16 = arith.constant 16 : index
    %c0_132 = arith.constant 0 : index
    %104 = vector.load %arg11[%c16, %c0_132] : memref<32x128xf32, #tpu.memory_space<vmem>>, vector<3x128xf32>
    %105 = arith.select %70, %103, %104 : vector<3x128xi1>, vector<3x128xf32>
    %c3_133 = arith.constant 3 : index
    %c384_134 = arith.constant 384 : index
    %106 = vector.load %arg12[%c3_133, %c384_134] : memref<16x640xf32, #tpu.memory_space<vmem>>, vector<3x128xf32>
    tpu.vector_store %arg12[%c3_133, %c384_134], %105 {strides = array<i32>} : memref<16x640xf32, #tpu.memory_space<vmem>>, vector<3x128xf32>,
    %c17 = arith.constant 17 : index
    %c0_135 = arith.constant 0 : index
    %107 = vector.load %arg11[%c17, %c0_135] : memref<32x128xf32, #tpu.memory_space<vmem>>, vector<3x128xf32>
    %108 = arith.select %70, %107, %71 : vector<3x128xi1>, vector<3x128xf32>
    %c3_136 = arith.constant 3 : index
    %c512_137 = arith.constant 512 : index
    %109 = vector.load %arg12[%c3_136, %c512_137] : memref<16x640xf32, #tpu.memory_space<vmem>>, vector<3x128xf32>
    tpu.vector_store %arg12[%c3_136, %c512_137], %108 {strides = array<i32>} : memref<16x640xf32, #tpu.memory_space<vmem>>, vector<3x128xf32>,
    %c10_138 = arith.constant 10 : index
    %c0_139 = arith.constant 0 : index
    %110 = vector.load %arg11[%c10_138, %c0_139] : memref<32x128xf32, #tpu.memory_space<vmem>>, vector<3x128xf32>
    %c11_140 = arith.constant 11 : index
    %c0_141 = arith.constant 0 : index
    %111 = vector.load %arg11[%c11_140, %c0_141] : memref<32x128xf32, #tpu.memory_space<vmem>>, vector<3x128xf32>
    %112 = arith.select %70, %110, %111 : vector<3x128xi1>, vector<3x128xf32>
    %c6_142 = arith.constant 6 : index
    %c0_143 = arith.constant 0 : index
    %113 = vector.load %arg12[%c6_142, %c0_143] : memref<16x640xf32, #tpu.memory_space<vmem>>, vector<3x128xf32>
    tpu.vector_store %arg12[%c6_142, %c0_143], %112 {strides = array<i32>} : memref<16x640xf32, #tpu.memory_space<vmem>>, vector<3x128xf32>,
    %c12_144 = arith.constant 12 : index
    %c0_145 = arith.constant 0 : index
    %114 = vector.load %arg11[%c12_144, %c0_145] : memref<32x128xf32, #tpu.memory_space<vmem>>, vector<3x128xf32>
    %c15_146 = arith.constant 15 : index
    %c0_147 = arith.constant 0 : index
    %115 = vector.load %arg11[%c15_146, %c0_147] : memref<32x128xf32, #tpu.memory_space<vmem>>, vector<3x128xf32>
    %116 = arith.select %70, %114, %115 : vector<3x128xi1>, vector<3x128xf32>
    %c6_148 = arith.constant 6 : index
    %c128_149 = arith.constant 128 : index
    %117 = vector.load %arg12[%c6_148, %c128_149] : memref<16x640xf32, #tpu.memory_space<vmem>>, vector<3x128xf32>
    tpu.vector_store %arg12[%c6_148, %c128_149], %116 {strides = array<i32>} : memref<16x640xf32, #tpu.memory_space<vmem>>, vector<3x128xf32>,
    %c16_150 = arith.constant 16 : index
    %c0_151 = arith.constant 0 : index
    %118 = vector.load %arg11[%c16_150, %c0_151] : memref<32x128xf32, #tpu.memory_space<vmem>>, vector<3x128xf32>
    %c17_152 = arith.constant 17 : index
    %c0_153 = arith.constant 0 : index
    %119 = vector.load %arg11[%c17_152, %c0_153] : memref<32x128xf32, #tpu.memory_space<vmem>>, vector<3x128xf32>
    %120 = arith.select %70, %118, %119 : vector<3x128xi1>, vector<3x128xf32>
    %c6_154 = arith.constant 6 : index
    %c256_155 = arith.constant 256 : index
    %121 = vector.load %arg12[%c6_154, %c256_155] : memref<16x640xf32, #tpu.memory_space<vmem>>, vector<3x128xf32>
    tpu.vector_store %arg12[%c6_154, %c256_155], %120 {strides = array<i32>} : memref<16x640xf32, #tpu.memory_space<vmem>>, vector<3x128xf32>,
    %c20_156 = arith.constant 20 : index
    %c0_157 = arith.constant 0 : index
    %122 = vector.load %arg11[%c20_156, %c0_157] : memref<32x128xf32, #tpu.memory_space<vmem>>, vector<3x128xf32>
    %c21 = arith.constant 21 : index
    %c0_158 = arith.constant 0 : index
    %123 = vector.load %arg11[%c21, %c0_158] : memref<32x128xf32, #tpu.memory_space<vmem>>, vector<3x128xf32>
    %124 = arith.select %70, %122, %123 : vector<3x128xi1>, vector<3x128xf32>
    %c6_159 = arith.constant 6 : index
    %c384_160 = arith.constant 384 : index
    %125 = vector.load %arg12[%c6_159, %c384_160] : memref<16x640xf32, #tpu.memory_space<vmem>>, vector<3x128xf32>
    tpu.vector_store %arg12[%c6_159, %c384_160], %124 {strides = array<i32>} : memref<16x640xf32, #tpu.memory_space<vmem>>, vector<3x128xf32>,
    %c22 = arith.constant 22 : index
    %c0_161 = arith.constant 0 : index
    %126 = vector.load %arg11[%c22, %c0_161] : memref<32x128xf32, #tpu.memory_space<vmem>>, vector<3x128xf32>
    %127 = arith.select %70, %126, %71 : vector<3x128xi1>, vector<3x128xf32>
    %c6_162 = arith.constant 6 : index
    %c512_163 = arith.constant 512 : index
    %128 = vector.load %arg12[%c6_162, %c512_163] : memref<16x640xf32, #tpu.memory_space<vmem>>, vector<3x128xf32>
    tpu.vector_store %arg12[%c6_162, %c512_163], %127 {strides = array<i32>} : memref<16x640xf32, #tpu.memory_space<vmem>>, vector<3x128xf32>,
    %c1_i32_164 = arith.constant 1 : i32
    %129 = tpu.memref_slice %arg15[%c1_i32_164] : memref<2x!tpu.dma_semaphore, #tpu.memory_space<semaphore_mem>> -> memref<1x!tpu.dma_semaphore, #tpu.memory_space<semaphore_mem>>
    %130 = tpu.memref_squeeze %129 : memref<1x!tpu.dma_semaphore, #tpu.memory_space<semaphore_mem>> -> memref<!tpu.dma_semaphore, #tpu.memory_space<semaphore_mem>>
    tpu.wait_dma2 semaphore(%130 : memref<!tpu.dma_semaphore, #tpu.memory_space<semaphore_mem>>) src(%arg6 : memref<640x128xf32, #tpu.memory_space<any>>) dst(%arg14 : memref<640x128xf32, #tpu.memory_space<vmem>>)
    %c0_165 = arith.constant 0 : index
    %c0_166 = arith.constant 0 : index
    %131 = vector.load %arg12[%c0_165, %c0_166] : memref<16x640xf32, #tpu.memory_space<vmem>>, vector<16x640xf32>
    %c0_167 = arith.constant 0 : index
    %c0_168 = arith.constant 0 : index
    %132 = vector.load %arg14[%c0_167, %c0_168] : memref<640x128xf32, #tpu.memory_space<vmem>>, vector<640x128xf32>
    %cst_169 = arith.constant dense<0.000000e+00> : vector<16x128xf32>
    %133 = tpu.matmul %131, %132, %cst_169 {dimension_numbers = #tpu.dot_dimension_numbers<[1], [0], [0], [1], [0, 0, 1, 1], [], []>} : vector<16x640xf32>, vector<640x128xf32>, vector<16x128xf32> -> vector<16x128xf32>
    %c0_170 = arith.constant 0 : index
    %c0_171 = arith.constant 0 : index
    %134 = vector.load %arg7[%c0_170, %c0_171] : memref<1x128xf32, #tpu.memory_space<vmem>>, vector<1x128xf32>
    %135 = vector.broadcast %134 : vector<1x128xf32> to vector<16x128xf32>
    %136 = arith.addf %133, %135 : vector<16x128xf32>
    %cst_172 = arith.constant 0.000000e+00 : f32
    %137 = vector.broadcast %cst_172 : f32 to vector<16x128xf32>
    %138 = arith.maximumf %136, %137 : vector<16x128xf32>
    %c0_173 = arith.constant 0 : index
    %c0_174 = arith.constant 0 : index
    %139 = vector.load %arg8[%c0_173, %c0_174] : memref<16x128xf32, #tpu.memory_space<vmem>>, vector<16x128xf32>
    tpu.vector_store %arg8[%c0_173, %c0_174], %138 {strides = array<i32>} : memref<16x128xf32, #tpu.memory_space<vmem>>, vector<16x128xf32>,
    return
  }
  func.func @transform_0(%arg0: i32) -> (i32, i32) {
    %c0_i32 = arith.constant 0 : i32
    %c0_i32_0 = arith.constant 0 : i32
    return %arg0, %c0_i32 : i32, i32
  }
  func.func @transform_1(%arg0: i32) -> (i32, i32) {
    %c0_i32 = arith.constant 0 : i32
    %c0_i32_0 = arith.constant 0 : i32
    %c0_i32_1 = arith.constant 0 : i32
    return %c0_i32, %c0_i32_0 : i32, i32
  }
  func.func @transform_2(%arg0: i32) -> (i32, i32) {
    %c0_i32 = arith.constant 0 : i32
    %c0_i32_0 = arith.constant 0 : i32
    %c0_i32_1 = arith.constant 0 : i32
    return %c0_i32, %c0_i32_0 : i32, i32
  }
  func.func @transform_4(%arg0: i32) -> (i32, i32) {
    %c0_i32 = arith.constant 0 : i32
    %c0_i32_0 = arith.constant 0 : i32
    %c0_i32_1 = arith.constant 0 : i32
    return %c0_i32, %c0_i32_0 : i32, i32
  }
  func.func @transform_6(%arg0: i32) -> (i32, i32) {
    %c0_i32 = arith.constant 0 : i32
    %c0_i32_0 = arith.constant 0 : i32
    %c0_i32_1 = arith.constant 0 : i32
    return %c0_i32, %c0_i32_0 : i32, i32
  }
  func.func @transform_7(%arg0: i32) -> (i32, i32) {
    %c0_i32 = arith.constant 0 : i32
    %c0_i32_0 = arith.constant 0 : i32
    return %arg0, %c0_i32 : i32, i32
  }
}

</mosaic_0001>

<bundles_post_ra>
// kernel: tile.8
= control target key start
LH: loop header
LB: loop body
LE: loop exit
PB: predicated region body
PF: predicated region fallthrough
CT: control target
= control target key end

     0   :  { %s22_s0 = inlined_call_operand.vmem [shape: f32[32], index: 0, kind: input, shape index: {}]   ;;  %s23_s1 = inlined_call_operand.vmem [shape: f32[4,32], index: 1, kind: output, shape index: {}]  }
   0x1   :  { %v4_v0 = vld [vmem:[%s22_s0] ss:$0 sm:$0xff] }
   0x2   :  { %5 = vst [vmem:[%s23_s1] sm:$0xf] %v4_v0 }

// kernel: tile.9
= control target key start
LH: loop header
LB: loop body
LE: loop exit
PB: predicated region body
PF: predicated region fallthrough
CT: control target
= control target key end

     0   :  { %vm7_vm0 = vcmask 261120   ;;  %s37_s8 = smov 32   ;;  %s38_s9 = smov 64   ;;  %vm13_vm1 = vcmask 1048320   ;;  %vm19_vm2 = vcmask 785920   ;;  %vm25_vm3 = vcmask 523520   ;;  %s55_s0 = inlined_call_operand.vmem [shape: f32[4,32], index: 0, kind: input, shape index: {}]   ;;  %s56_s1 = inlined_call_operand.vmem [shape: f32[1,128], index: 1, kind: output, shape index: {}]  }
   0x1   :  { %v4_v0 = vld [vmem:[%s55_s0] sm:$0xf]  ;;  %s36_s0 = smov 96  }
   0x2   :  { %5 = vst [vmem:[#allocation1] sm:$0xf] %v4_v0 }
   0x9   :  { %v10_v1 = vld [vmem:[#allocation1 + $0x3] sm:$0x1]   ;;  %v22_v2 = vld [vmem:[#allocation1 + $0x1] sm:$0x1]   ;;  %v6_v3 = vld [vmem:[#allocation1] sm:$0x1]  }
   0xa   :  { %11 = vrot.lane.b32.xlu0 %v10_v1, %s36_s0  ;;  %23 = vrot.lane.b32.xlu1 %v22_v2, %s37_s8  ;;  %v16_v4 = vld [vmem:[#allocation1 + $0x2] sm:$0x1]   ;;  %8 = vst.msk [vmem:[#allocation0] sm:$0x1] %vm7_vm0, %v6_v3  }
   0xe   :  { %17 = vrot.lane.b32.xlu0 %v16_v4, %s38_s9 }
  0x7c   :  { %v12_v5 = vpop.permute.xlu0 %11   ;;  %v24_v6 = vpop.permute.xlu1 %23  }
  0x7d   :  { %14 = vst.msk [vmem:[#allocation0] sm:$0x1] %vm13_vm1, %v12_v5  }
  0x80   :  { %v18_v7 = vpop.permute.xlu0 %17  }
  0x81   :  { %20 = vst.msk [vmem:[#allocation0] sm:$0x1] %vm19_vm2, %v18_v7  }
  0x82   :  { %26 = vst.msk [vmem:[#allocation0] sm:$0x1] %vm25_vm3, %v24_v6  }
  0x89   :  { %v30_v8 = vld [vmem:[#allocation0] sm:$0x1] }
  0x8a   :  { %32 = vst [vmem:[%s56_s1] sm:$0x1] %v30_v8 }

// kernel: feature_extractor_forward.1
= control target key start
LH: loop header
LB: loop body
LE: loop exit
PB: predicated region body
PF: predicated region fallthrough
CT: control target
= control target key end

     0   :  { %s2822_s24 = smov 0   ;;  %s4175_s0 = inlined_call_operand.vmem [shape: f32[80,1024], index: 0, kind: input, shape index: {}]   ;;  %s4176_s1 = inlined_call_operand.vmem [shape: f32[1024,128], index: 1, kind: input, shape index: {}]   ;;  %s4177_s2 = inlined_call_operand.vmem [shape: f32[1,128], index: 2, kind: input, shape index: {}]   ;;  %s4178_s3 = inlined_call_operand.vmem [shape: f32[512,128], index: 3, kind: input, shape index: {}]   ;;  %s4179_s4 = inlined_call_operand.vmem [shape: f32[1,128], index: 4, kind: input, shape index: {}]   ;;  %s4180_s5 = inlined_call_operand.vmem [shape: f32[640,128], index: 5, kind: input, shape index: {}]   ;;  %s4181_s6 = inlined_call_operand.vmem [shape: f32[1,128], index: 6, kind: input, shape index: {}]   ;;  %s4182_s7 = inlined_call_operand.vmem [shape: f32[32,128], index: 7, kind: output, shape index: {}]  }
   0x1 LB: > { %s2050_s25 = sadd.s32 4294967295, %s2779_s24   ;;  %p2054_p0 = scmp.ge.s32.totalorder %s2779_s24, 1  ;;  %s2779_s24 = sphi %s2822_s24, %s17_s24  }
   0x2   : > { %p191_p1 = scmp.lt.s32.totalorder %s2779_s24, 3 }
   0x4   : > { %p192_p2 = pnand %p2054_p0, %p191_p1 }
   0x6   : > { %195 = sbr.rel (%p192_p2) target bundleno = 967 (0x3c7), region = 40 }
   0xd   : > { %s220_s26 = smul.u32 5, %s2050_s25  ;;  %s2057_s27 = sshll.u32 %s2050_s25, 1  ;;  %v2833_v0 = vld [vmem:[%s4178_s3] sm:$0xff]  ;;  %v2838_v1 = vld [vmem:[%s4178_s3 + $0x8] sm:$0xff]  ;;  %v2843_v2 = vld [vmem:[%s4178_s3 + $0x10] sm:$0xff] }
   0xe   : > { %p228_p3 = scmp.lt.s32.totalorder %s2057_s27, 3  ;;  %v2848_v3 = vld [vmem:[%s4178_s3 + $0x18] sm:$0xff]  ;;  %v2853_v4 = vld [vmem:[%s4178_s3 + $0x20] sm:$0xff]  ;;  %v2858_v5 = vld [vmem:[%s4178_s3 + $0x28] sm:$0xff] }
   0xf   : > { %p221_p4 = scmp.lt.s32.totalorder %s220_s26, 9  ;;  %v2863_v6 = vld [vmem:[%s4178_s3 + $0x30] sm:$0xff]  ;;  %v2868_v7 = vld [vmem:[%s4178_s3 + $0x38] sm:$0xff]  ;;  %v2873_v8 = vld [vmem:[%s4178_s3 + $0x40] sm:$0xff] }
  0x10   : > { %4183 = vst [vmem:[#allocation13_spill] sm:$0xff] %v2873_v8  ;;  %s4400_s27 = smov (!%p228_p3, %s2057_s27), 3  ;;  %v2878_v9 = vld [vmem:[%s4178_s3 + $0x48] sm:$0xff]  ;;  %v2883_v10 = vld [vmem:[%s4178_s3 + $0x50] sm:$0xff]  ;;  %v2888_v11 = vld [vmem:[%s4178_s3 + $0x58] sm:$0xff] }
  0x11   : > { %4184 = vst [vmem:[#allocation14_spill] sm:$0xff] %v2878_v9  ;;  %4185 = vst [vmem:[#allocation15_spill] sm:$0xff] %v2883_v10  ;;  %s4402_s26 = smov (!%p221_p4, %s220_s26), 9  ;;  %v2893_v12 = vld [vmem:[%s4178_s3 + $0x60] sm:$0xff]  ;;  %v2898_v13 = vld [vmem:[%s4178_s3 + $0x68] sm:$0xff]  ;;  %s2058_s15 = sshll.u32 %s4400_s27, 3 }
  0x12   : > { %4186 = vst [vmem:[#allocation16_spill] sm:$0xff] %v2888_v11  ;;  %4187 = vst [vmem:[#allocation17_spill] sm:$0xff] %v2893_v12  ;;  %v2903_v14 = vld [vmem:[%s4178_s3 + $0x70] sm:$0xff]  ;;  %v2908_v15 = vld [vmem:[%s4178_s3 + $0x78] sm:$0xff]  ;;  %s2066_s22 = sshll.u32 %s4402_s26, 6  ;;  %s2923_s27 = scalar_lea.vmem %s4182_s7, %s2058_s15 }
  0x13   : > { %4188 = vst [vmem:[#allocation18_spill] sm:$0xff] %v2898_v13  ;;  %4189 = vst [vmem:[#allocation19_spill] sm:$0xff] %v2903_v14  ;;  %v2913_v16 = vld [vmem:[%s4178_s3 + $0x80] sm:$0xff]  ;;  %v2918_v17 = vld [vmem:[%s4178_s3 + $0x88] sm:$0xff]  ;;  %s2943_s12 = scalar_lea.vmem %s4175_s0, %s2066_s22 }
  0x14   : > { %4190 = vst [vmem:[#allocation20_spill] sm:$0xff] %v2908_v15  ;;  %v2928_v18 = vld [vmem:[%s4178_s3 + $0x90] sm:$0xff]  ;;  %v2933_v19 = vld [vmem:[%s4178_s3 + $0x98] sm:$0xff]  ;;  %v2938_v20 = vld [vmem:[%s4178_s3 + $0xa0] sm:$0xff] }
  0x15   : > { %v2948_v21 = vld [vmem:[%s4178_s3 + $0xa8] sm:$0xff]  ;;  %v2953_v22 = vld [vmem:[%s4178_s3 + $0xb0] sm:$0xff]  ;;  %v2958_v23 = vld [vmem:[%s4178_s3 + $0xb8] sm:$0xff] }
  0x16   : > { %v2963_v24 = vld [vmem:[%s4178_s3 + $0xc0] sm:$0xff]  ;;  %v2968_v25 = vld [vmem:[%s4178_s3 + $0xc8] sm:$0xff]  ;;  %v2973_v26 = vld [vmem:[%s4178_s3 + $0xd0] sm:$0xff] }
  0x17   : > { %4191 = vst [vmem:[#allocation21_spill] sm:$0xff] %v2973_v26  ;;  %v2978_v27 = vld [vmem:[%s4178_s3 + $0xd8] sm:$0xff]  ;;  %v2983_v28 = vld [vmem:[%s4178_s3 + $0xe0] sm:$0xff]  ;;  %v2988_v29 = vld [vmem:[%s4178_s3 + $0xe8] sm:$0xff] }
  0x18   : > { %4192 = vst [vmem:[#allocation22_spill] sm:$0xff] %v2978_v27  ;;  %4193 = vst [vmem:[#allocation23_spill] sm:$0xff] %v2983_v28  ;;  %v2993_v30 = vld [vmem:[%s4178_s3 + $0xf0] sm:$0xff]  ;;  %v2998_v31 = vld [vmem:[%s4178_s3 + $0xf8] sm:$0xff] }
  0x19   : > { %4194 = vst [vmem:[#allocation24_spill] sm:$0xff] %v2988_v29  ;;  %4195 = vst [vmem:[#allocation25_spill] sm:$0xff] %v2993_v30  ;;  %v3003_v32 = vld [vmem:[%s4178_s3 + $0x100] sm:$0xff]  ;;  %v3008_v33 = vld [vmem:[%s4178_s3 + $0x108] sm:$0xff] }
  0x1a   : > { %4196 = vst [vmem:[#allocation26_spill] sm:$0xff] %v2998_v31  ;;  %v3013_v34 = vld [vmem:[%s4178_s3 + $0x110] sm:$0xff]  ;;  %v3018_v35 = vld [vmem:[%s4178_s3 + $0x118] sm:$0xff]  ;;  %v3023_v36 = vld [vmem:[%s4178_s3 + $0x120] sm:$0xff] }
  0x1b   : > { %v3028_v37 = vld [vmem:[%s4178_s3 + $0x128] sm:$0xff]  ;;  %v3033_v38 = vld [vmem:[%s4178_s3 + $0x130] sm:$0xff]  ;;  %v3038_v39 = vld [vmem:[%s4178_s3 + $0x138] sm:$0xff] }
  0x1c   : > { %v3043_v40 = vld [vmem:[%s4178_s3 + $0x140] sm:$0xff]  ;;  %v3048_v41 = vld [vmem:[%s4178_s3 + $0x148] sm:$0xff]  ;;  %v3053_v42 = vld [vmem:[%s4178_s3 + $0x150] sm:$0xff] }
  0x1d   : > { %4197 = vst [vmem:[#allocation27_spill] sm:$0xff] %v3043_v40  ;;  %4198 = vst [vmem:[#allocation28_spill] sm:$0xff] %v3048_v41  ;;  %v3058_v43 = vld [vmem:[%s4178_s3 + $0x158] sm:$0xff]  ;;  %v3063_v44 = vld [vmem:[%s4178_s3 + $0x160] sm:$0xff] }
  0x1e   : > { %4199 = vst [vmem:[#allocation29_spill] sm:$0xff] %v3053_v42  ;;  %4200 = vst [vmem:[#allocation30_spill] sm:$0xff] %v3058_v43  ;;  %v3068_v45 = vld [vmem:[%s4178_s3 + $0x168] sm:$0xff]  ;;  %v3073_v46 = vld [vmem:[%s4178_s3 + $0x170] sm:$0xff] }
  0x1f   : > { %4201 = vst [vmem:[#allocation31_spill] sm:$0xff] %v3063_v44  ;;  %4202 = vst [vmem:[#allocation32_spill] sm:$0xff] %v3068_v45  ;;  %v3078_v47 = vld [vmem:[%s4178_s3 + $0x178] sm:$0xff]  ;;  %v3083_v48 = vld [vmem:[%s4178_s3 + $0x180] sm:$0xff] }
  0x20   : > { %4203 = vst [vmem:[#allocation33_spill] sm:$0xff] %v3073_v46  ;;  %4204 = vst [vmem:[#allocation34_spill] sm:$0xff] %v3078_v47  ;;  %v3088_v49 = vld [vmem:[%s4178_s3 + $0x188] sm:$0xff]  ;;  %v3093_v50 = vld [vmem:[%s4178_s3 + $0x190] sm:$0xff] }
  0x21   : > { %v3098_v51 = vld [vmem:[%s4178_s3 + $0x198] sm:$0xff]  ;;  %v3103_v52 = vld [vmem:[%s4178_s3 + $0x1a0] sm:$0xff]  ;;  %v3108_v53 = vld [vmem:[%s4178_s3 + $0x1a8] sm:$0xff] }
  0x22   : > { %v3113_v54 = vld [vmem:[%s4178_s3 + $0x1b0] sm:$0xff]  ;;  %v3118_v55 = vld [vmem:[%s4178_s3 + $0x1b8] sm:$0xff]  ;;  %v3123_v56 = vld [vmem:[%s4178_s3 + $0x1c0] sm:$0xff] }
  0x23   : > { %v3128_v57 = vld [vmem:[%s4178_s3 + $0x1c8] sm:$0xff]  ;;  %v3133_v58 = vld [vmem:[%s4178_s3 + $0x1d0] sm:$0xff]  ;;  %v3138_v59 = vld [vmem:[%s4178_s3 + $0x1d8] sm:$0xff] }
  0x24   : > { %4205 = vst [vmem:[#allocation35_spill] sm:$0xff] %v3133_v58  ;;  %4206 = vst [vmem:[#allocation36_spill] sm:$0xff] %v3138_v59  ;;  %v3143_v60 = vld [vmem:[%s4178_s3 + $0x1e0] sm:$0xff]  ;;  %v3148_v61 = vld [vmem:[%s4178_s3 + $0x1e8] sm:$0xff] }
  0x25   : > { %4207 = vst [vmem:[#allocation37_spill] sm:$0xff] %v3143_v60  ;;  %4208 = vst [vmem:[#allocation38_spill] sm:$0xff] %v3148_v61  ;;  %v3153_v62 = vld [vmem:[%s4178_s3 + $0x1f0] sm:$0xff]  ;;  %v3158_v63 = vld [vmem:[%s4178_s3 + $0x1f8] sm:$0xff] }
  0x26   : > { %4209 = vst [vmem:[#allocation39_spill] sm:$0xff] %v3153_v62  ;;  %4210 = vst [vmem:[#allocation40_spill] sm:$0xff] %v3158_v63 }
  0x27   : > { %400 = vsyncadd [#allocation8], 8192  ;;  %v3163_v47 = vld [vmem:[%s4180_s5] sm:$0xff]  ;;  %v3168_v46 = vld [vmem:[%s4180_s5 + $0x8] sm:$0xff] }
  0x28   : > { %4211 = vst [vmem:[#allocation41_spill] sm:$0xff] %v3163_v47  ;;  %4212 = vst [vmem:[#allocation42_spill] sm:$0xff] %v3168_v46  ;;  %v3173_v15 = vld [vmem:[%s4180_s5 + $0x10] sm:$0xff]  ;;  %v3178_v14 = vld [vmem:[%s4180_s5 + $0x18] sm:$0xff] }
  0x29   : > { %4213 = vst [vmem:[#allocation43_spill] sm:$0xff] %v3173_v15  ;;  %4214 = vst [vmem:[#allocation44_spill] sm:$0xff] %v3178_v14  ;;  %v3183_v63 = vld [vmem:[%s4180_s5 + $0x20] sm:$0xff]  ;;  %v3188_v47 = vld [vmem:[%s4180_s5 + $0x28] sm:$0xff] }
  0x2a   : > { %4215 = vst [vmem:[#allocation45_spill] sm:$0xff] %v3183_v63  ;;  %4216 = vst [vmem:[#allocation46_spill] sm:$0xff] %v3188_v47  ;;  %v3193_v46 = vld [vmem:[%s4180_s5 + $0x30] sm:$0xff]  ;;  %v3198_v15 = vld [vmem:[%s4180_s5 + $0x38] sm:$0xff] }
  0x2b   : > { %4217 = vst [vmem:[#allocation47_spill] sm:$0xff] %v3193_v46  ;;  %4218 = vst [vmem:[#allocation48_spill] sm:$0xff] %v3198_v15  ;;  %v3203_v14 = vld [vmem:[%s4180_s5 + $0x40] sm:$0xff]  ;;  %v3208_v63 = vld [vmem:[%s4180_s5 + $0x48] sm:$0xff] }
  0x2c   : > { %4219 = vst [vmem:[#allocation49_spill] sm:$0xff] %v3203_v14  ;;  %4220 = vst [vmem:[#allocation50_spill] sm:$0xff] %v3208_v63  ;;  %v3213_v47 = vld [vmem:[%s4180_s5 + $0x50] sm:$0xff]  ;;  %v3218_v46 = vld [vmem:[%s4180_s5 + $0x58] sm:$0xff] }
  0x2d   : > { %4221 = vst [vmem:[#allocation51_spill] sm:$0xff] %v3213_v47  ;;  %4222 = vst [vmem:[#allocation52_spill] sm:$0xff] %v3218_v46  ;;  %v3223_v15 = vld [vmem:[%s4180_s5 + $0x60] sm:$0xff]  ;;  %v3228_v14 = vld [vmem:[%s4180_s5 + $0x68] sm:$0xff] }
  0x2e   : > { %4223 = vst [vmem:[#allocation53_spill] sm:$0xff] %v3223_v15  ;;  %4224 = vst [vmem:[#allocation54_spill] sm:$0xff] %v3228_v14  ;;  %v3233_v63 = vld [vmem:[%s4180_s5 + $0x70] sm:$0xff]  ;;  %v3238_v47 = vld [vmem:[%s4180_s5 + $0x78] sm:$0xff] }
  0x2f   : > { %4225 = vst [vmem:[#allocation55_spill] sm:$0xff] %v3233_v63  ;;  %4226 = vst [vmem:[#allocation56_spill] sm:$0xff] %v3238_v47  ;;  %v3243_v46 = vld [vmem:[%s4180_s5 + $0x80] sm:$0xff]  ;;  %v3248_v15 = vld [vmem:[%s4180_s5 + $0x88] sm:$0xff] }
  0x30   : > { %4227 = vst [vmem:[#allocation57_spill] sm:$0xff] %v3243_v46  ;;  %4228 = vst [vmem:[#allocation58_spill] sm:$0xff] %v3248_v15  ;;  %v3253_v14 = vld [vmem:[%s4180_s5 + $0x90] sm:$0xff]  ;;  %v3258_v63 = vld [vmem:[%s4180_s5 + $0x98] sm:$0xff] }
  0x31   : > { %4229 = vst [vmem:[#allocation59_spill] sm:$0xff] %v3253_v14  ;;  %4230 = vst [vmem:[#allocation60_spill] sm:$0xff] %v3258_v63  ;;  %v3263_v47 = vld [vmem:[%s4180_s5 + $0xa0] sm:$0xff]  ;;  %v3268_v46 = vld [vmem:[%s4180_s5 + $0xa8] sm:$0xff] }
  0x32   : > { %4231 = vst [vmem:[#allocation61_spill] sm:$0xff] %v3263_v47  ;;  %4232 = vst [vmem:[#allocation62_spill] sm:$0xff] %v3268_v46  ;;  %v3273_v15 = vld [vmem:[%s4180_s5 + $0xb0] sm:$0xff]  ;;  %v3278_v14 = vld [vmem:[%s4180_s5 + $0xb8] sm:$0xff] }
  0x33   : > { %4233 = vst [vmem:[#allocation63_spill] sm:$0xff] %v3273_v15  ;;  %4234 = vst [vmem:[#allocation64_spill] sm:$0xff] %v3278_v14  ;;  %v3283_v63 = vld [vmem:[%s4180_s5 + $0xc0] sm:$0xff]  ;;  %v3288_v47 = vld [vmem:[%s4180_s5 + $0xc8] sm:$0xff] }
  0x34   : > { %4235 = vst [vmem:[#allocation65_spill] sm:$0xff] %v3283_v63  ;;  %4236 = vst [vmem:[#allocation66_spill] sm:$0xff] %v3288_v47  ;;  %v3293_v46 = vld [vmem:[%s4180_s5 + $0xd0] sm:$0xff]  ;;  %v3298_v15 = vld [vmem:[%s4180_s5 + $0xd8] sm:$0xff] }
  0x35   : > { %4237 = vst [vmem:[#allocation67_spill] sm:$0xff] %v3293_v46  ;;  %4238 = vst [vmem:[#allocation68_spill] sm:$0xff] %v3298_v15  ;;  %v3303_v14 = vld [vmem:[%s4180_s5 + $0xe0] sm:$0xff]  ;;  %v3308_v63 = vld [vmem:[%s4180_s5 + $0xe8] sm:$0xff] }
  0x36   : > { %4239 = vst [vmem:[#allocation69_spill] sm:$0xff] %v3303_v14  ;;  %4240 = vst [vmem:[#allocation70_spill] sm:$0xff] %v3308_v63  ;;  %v3313_v47 = vld [vmem:[%s4180_s5 + $0xf0] sm:$0xff]  ;;  %v3318_v46 = vld [vmem:[%s4180_s5 + $0xf8] sm:$0xff] }
  0x37   : > { %4241 = vst [vmem:[#allocation71_spill] sm:$0xff] %v3313_v47  ;;  %4242 = vst [vmem:[#allocation72_spill] sm:$0xff] %v3318_v46  ;;  %v3323_v15 = vld [vmem:[%s4180_s5 + $0x100] sm:$0xff]  ;;  %v3328_v14 = vld [vmem:[%s4180_s5 + $0x108] sm:$0xff] }
  0x38   : > { %4243 = vst [vmem:[#allocation73_spill] sm:$0xff] %v3323_v15  ;;  %4244 = vst [vmem:[#allocation74_spill] sm:$0xff] %v3328_v14  ;;  %v3333_v63 = vld [vmem:[%s4180_s5 + $0x110] sm:$0xff]  ;;  %v3338_v47 = vld [vmem:[%s4180_s5 + $0x118] sm:$0xff] }
  0x39   : > { %4245 = vst [vmem:[#allocation75_spill] sm:$0xff] %v3333_v63  ;;  %4246 = vst [vmem:[#allocation76_spill] sm:$0xff] %v3338_v47  ;;  %v3343_v46 = vld [vmem:[%s4180_s5 + $0x120] sm:$0xff]  ;;  %v3348_v15 = vld [vmem:[%s4180_s5 + $0x128] sm:$0xff] }
  0x3a   : > { %4247 = vst [vmem:[#allocation77_spill] sm:$0xff] %v3343_v46  ;;  %4248 = vst [vmem:[#allocation78_spill] sm:$0xff] %v3348_v15  ;;  %v3353_v14 = vld [vmem:[%s4180_s5 + $0x130] sm:$0xff]  ;;  %v3358_v63 = vld [vmem:[%s4180_s5 + $0x138] sm:$0xff] }
  0x3b   : > { %4249 = vst [vmem:[#allocation79_spill] sm:$0xff] %v3353_v14  ;;  %4250 = vst [vmem:[#allocation80_spill] sm:$0xff] %v3358_v63  ;;  %v3363_v47 = vld [vmem:[%s4180_s5 + $0x140] sm:$0xff]  ;;  %v3368_v46 = vld [vmem:[%s4180_s5 + $0x148] sm:$0xff] }
  0x3c   : > { %4251 = vst [vmem:[#allocation81_spill] sm:$0xff] %v3363_v47  ;;  %4252 = vst [vmem:[#allocation82_spill] sm:$0xff] %v3368_v46  ;;  %v3373_v15 = vld [vmem:[%s4180_s5 + $0x150] sm:$0xff]  ;;  %v3378_v14 = vld [vmem:[%s4180_s5 + $0x158] sm:$0xff] }
  0x3d   : > { %4253 = vst [vmem:[#allocation83_spill] sm:$0xff] %v3373_v15  ;;  %4254 = vst [vmem:[#allocation84_spill] sm:$0xff] %v3378_v14  ;;  %v3383_v63 = vld [vmem:[%s4180_s5 + $0x160] sm:$0xff]  ;;  %v3388_v47 = vld [vmem:[%s4180_s5 + $0x168] sm:$0xff] }
  0x3e   : > { %4255 = vst [vmem:[#allocation85_spill] sm:$0xff] %v3383_v63  ;;  %4256 = vst [vmem:[#allocation86_spill] sm:$0xff] %v3388_v47  ;;  %v3393_v46 = vld [vmem:[%s4180_s5 + $0x170] sm:$0xff]  ;;  %v3398_v15 = vld [vmem:[%s4180_s5 + $0x178] sm:$0xff] }
  0x3f   : > { %4257 = vst [vmem:[#allocation87_spill] sm:$0xff] %v3393_v46  ;;  %4258 = vst [vmem:[#allocation88_spill] sm:$0xff] %v3398_v15  ;;  %v3403_v14 = vld [vmem:[%s4180_s5 + $0x180] sm:$0xff]  ;;  %v3408_v63 = vld [vmem:[%s4180_s5 + $0x188] sm:$0xff] }
  0x40   : > { %4259 = vst [vmem:[#allocation89_spill] sm:$0xff] %v3403_v14  ;;  %4260 = vst [vmem:[#allocation90_spill] sm:$0xff] %v3408_v63  ;;  %v3413_v47 = vld [vmem:[%s4180_s5 + $0x190] sm:$0xff]  ;;  %v3418_v46 = vld [vmem:[%s4180_s5 + $0x198] sm:$0xff] }
  0x41   : > { %4261 = vst [vmem:[#allocation91_spill] sm:$0xff] %v3413_v47  ;;  %4262 = vst [vmem:[#allocation92_spill] sm:$0xff] %v3418_v46  ;;  %v3423_v15 = vld [vmem:[%s4180_s5 + $0x1a0] sm:$0xff]  ;;  %v3428_v14 = vld [vmem:[%s4180_s5 + $0x1a8] sm:$0xff] }
  0x42   : > { %4263 = vst [vmem:[#allocation93_spill] sm:$0xff] %v3423_v15  ;;  %4264 = vst [vmem:[#allocation94_spill] sm:$0xff] %v3428_v14  ;;  %v3433_v63 = vld [vmem:[%s4180_s5 + $0x1b0] sm:$0xff]  ;;  %v3438_v47 = vld [vmem:[%s4180_s5 + $0x1b8] sm:$0xff] }
  0x43   : > { %4265 = vst [vmem:[#allocation95_spill] sm:$0xff] %v3433_v63  ;;  %4266 = vst [vmem:[#allocation96_spill] sm:$0xff] %v3438_v47  ;;  %v3443_v46 = vld [vmem:[%s4180_s5 + $0x1c0] sm:$0xff]  ;;  %v3448_v15 = vld [vmem:[%s4180_s5 + $0x1c8] sm:$0xff] }
  0x44   : > { %4267 = vst [vmem:[#allocation97_spill] sm:$0xff] %v3443_v46  ;;  %4268 = vst [vmem:[#allocation98_spill] sm:$0xff] %v3448_v15  ;;  %v3453_v14 = vld [vmem:[%s4180_s5 + $0x1d0] sm:$0xff]  ;;  %v3458_v63 = vld [vmem:[%s4180_s5 + $0x1d8] sm:$0xff] }
  0x45   : > { %4269 = vst [vmem:[#allocation99_spill] sm:$0xff] %v3453_v14  ;;  %4270 = vst [vmem:[#allocation100_spill] sm:$0xff] %v3458_v63  ;;  %v3463_v47 = vld [vmem:[%s4180_s5 + $0x1e0] sm:$0xff]  ;;  %v3468_v46 = vld [vmem:[%s4180_s5 + $0x1e8] sm:$0xff] }
  0x46   : > { %4271 = vst [vmem:[#allocation101_spill] sm:$0xff] %v3463_v47  ;;  %4272 = vst [vmem:[#allocation102_spill] sm:$0xff] %v3468_v46  ;;  %v3473_v15 = vld [vmem:[%s4180_s5 + $0x1f0] sm:$0xff]  ;;  %v3478_v14 = vld [vmem:[%s4180_s5 + $0x1f8] sm:$0xff] }
  0x47   : > { %4273 = vst [vmem:[#allocation103_spill] sm:$0xff] %v3473_v15  ;;  %4274 = vst [vmem:[#allocation104_spill] sm:$0xff] %v3478_v14  ;;  %v3483_v63 = vld [vmem:[%s4180_s5 + $0x200] sm:$0xff]  ;;  %v3488_v47 = vld [vmem:[%s4180_s5 + $0x208] sm:$0xff] }
  0x48   : > { %4275 = vst [vmem:[#allocation105_spill] sm:$0xff] %v3483_v63  ;;  %4276 = vst [vmem:[#allocation106_spill] sm:$0xff] %v3488_v47  ;;  %v3493_v46 = vld [vmem:[%s4180_s5 + $0x210] sm:$0xff]  ;;  %v3498_v15 = vld [vmem:[%s4180_s5 + $0x218] sm:$0xff] }
  0x49   : > { %4277 = vst [vmem:[#allocation107_spill] sm:$0xff] %v3493_v46  ;;  %4278 = vst [vmem:[#allocation108_spill] sm:$0xff] %v3498_v15  ;;  %v3503_v14 = vld [vmem:[%s4180_s5 + $0x220] sm:$0xff]  ;;  %v3508_v63 = vld [vmem:[%s4180_s5 + $0x228] sm:$0xff] }
  0x4a   : > { %4279 = vst [vmem:[#allocation109_spill] sm:$0xff] %v3503_v14  ;;  %4280 = vst [vmem:[#allocation110_spill] sm:$0xff] %v3508_v63  ;;  %v3513_v47 = vld [vmem:[%s4180_s5 + $0x230] sm:$0xff]  ;;  %v3518_v46 = vld [vmem:[%s4180_s5 + $0x238] sm:$0xff] }
  0x4b   : > { %4281 = vst [vmem:[#allocation111_spill] sm:$0xff] %v3513_v47  ;;  %4282 = vst [vmem:[#allocation112_spill] sm:$0xff] %v3518_v46  ;;  %v3523_v15 = vld [vmem:[%s4180_s5 + $0x240] sm:$0xff]  ;;  %v3528_v14 = vld [vmem:[%s4180_s5 + $0x248] sm:$0xff] }
  0x4c   : > { %4283 = vst [vmem:[#allocation113_spill] sm:$0xff] %v3523_v15  ;;  %4284 = vst [vmem:[#allocation114_spill] sm:$0xff] %v3528_v14  ;;  %v3533_v63 = vld [vmem:[%s4180_s5 + $0x250] sm:$0xff]  ;;  %v3538_v47 = vld [vmem:[%s4180_s5 + $0x258] sm:$0xff] }
  0x4d   : > { %4285 = vst [vmem:[#allocation115_spill] sm:$0xff] %v3533_v63  ;;  %4286 = vst [vmem:[#allocation116_spill] sm:$0xff] %v3538_v47  ;;  %v3543_v46 = vld [vmem:[%s4180_s5 + $0x260] sm:$0xff]  ;;  %v3548_v15 = vld [vmem:[%s4180_s5 + $0x268] sm:$0xff] }
  0x4e   : > { %4287 = vst [vmem:[#allocation117_spill] sm:$0xff] %v3543_v46  ;;  %4288 = vst [vmem:[#allocation118_spill] sm:$0xff] %v3548_v15  ;;  %v3553_v14 = vld [vmem:[%s4180_s5 + $0x270] sm:$0xff]  ;;  %v3558_v63 = vld [vmem:[%s4180_s5 + $0x278] sm:$0xff] }
  0x4f   : > { %4289 = vst [vmem:[#allocation119_spill] sm:$0xff] %v3553_v14  ;;  %4290 = vst [vmem:[#allocation120_spill] sm:$0xff] %v3558_v63 }
  0x50   : > { %601 = vsyncadd [#allocation8 + $0x1], 10240  ;;  %v658_v46 = vld [vmem:[%s4176_s1 + $0x80] sm:$0xff]  ;;  %v659_v47 = vld [vmem:[%s4176_s1 + $0x88] sm:$0xff] }
  0x51   : > { %v2472_v15 = vpack.c.bf16 %v659_v47, %v658_v46  ;;  %v642_v62 = vld [vmem:[%s4176_s1] sm:$0xff]  ;;  %v643_v14 = vld [vmem:[%s4176_s1 + $0x8] sm:$0xff]  ;;  %v660_v13 = vld [vmem:[%s4176_s1 + $0x90] sm:$0xff] }
  0x52   : > { %v690_v63 = vld [vmem:[%s4176_s1 + $0x180] sm:$0xff]  ;;  %v2474_v31 = vpack.c.bf16 %v643_v14, %v642_v62  ;;  %v691_v30 = vld [vmem:[%s4176_s1 + $0x188] sm:$0xff]  ;;  %v661_v14 = vld [vmem:[%s4176_s1 + $0x98] sm:$0xff] }
  0x53   : > { %v674_v46 = vld [vmem:[%s4176_s1 + $0x100] sm:$0xff]  ;;  %v675_v47 = vld [vmem:[%s4176_s1 + $0x108] sm:$0xff]  ;;  %2473 = vmatprep.subr.bf16.mxu0 %v2472_v15  ;;  %v2504_v45 = vpack.c.bf16 %v691_v30, %v690_v63  ;;  %v644_v62 = vld [vmem:[%s4176_s1 + $0x10] sm:$0xff]  ;;  %v2476_v12 = vpack.c.bf16 %v661_v14, %v660_v13 }
  0x54   : > { %v2506_v44 = vpack.c.bf16 %v675_v47, %v674_v46  ;;  %2475 = vmatpush3.bf16.msra.mxu0 %v2474_v31  ;;  %v645_v15 = vld [vmem:[%s4176_s1 + $0x18] sm:$0xff]  ;;  %v692_v30 = vld [vmem:[%s4176_s1 + $0x190] sm:$0xff]  ;;  %v662_v14 = vld [vmem:[%s4176_s1 + $0xa0] sm:$0xff] }
  0x55   : > { %v693_v63 = vld [vmem:[%s4176_s1 + $0x198] sm:$0xff]  ;;  %2505 = vmatprep.subr.bf16.mxu1 %v2504_v45  ;;  %v2478_v46 = vpack.c.bf16 %v645_v15, %v644_v62  ;;  %v676_v31 = vld [vmem:[%s4176_s1 + $0x110] sm:$0xff]  ;;  %2477 = vmatprep.subr.bf16.mxu0 %v2476_v12  ;;  %v663_v45 = vld [vmem:[%s4176_s1 + $0xa8] sm:$0xff] }
  0x56   : > { %v2508_v47 = vpack.c.bf16 %v693_v63, %v692_v30  ;;  %v677_v13 = vld [vmem:[%s4176_s1 + $0x118] sm:$0xff]  ;;  %2507 = vmatpush3.bf16.msra.mxu1 %v2506_v44  ;;  %v646_v62 = vld [vmem:[%s4176_s1 + $0x20] sm:$0xff]  ;;  %v647_v15 = vld [vmem:[%s4176_s1 + $0x28] sm:$0xff]  ;;  %v2480_v30 = vpack.c.bf16 %v663_v45, %v662_v14 }
  0x57   : > { %v2510_v61 = vpack.c.bf16 %v677_v13, %v676_v31  ;;  %v694_v44 = vld [vmem:[%s4176_s1 + $0x1a0] sm:$0xff]  ;;  %v695_v12 = vld [vmem:[%s4176_s1 + $0x1a8] sm:$0xff]  ;;  %v2482_v31 = vpack.c.bf16 %v647_v15, %v646_v62  ;;  %v664_v14 = vld [vmem:[%s4176_s1 + $0xb0] sm:$0xff] }
  0x58   : > { %2509 = vmatprep.subr.bf16.mxu1 %v2508_v47  ;;  %v678_v63 = vld [vmem:[%s4176_s1 + $0x120] sm:$0xff]  ;;  %2479 = vmatpush3.bf16.msra.mxu0 %v2478_v46  ;;  %v2512_v13 = vpack.c.bf16 %v695_v12, %v694_v44  ;;  %v679_v47 = vld [vmem:[%s4176_s1 + $0x128] sm:$0xff]  ;;  %v665_v45 = vld [vmem:[%s4176_s1 + $0xb8] sm:$0xff] }
  0x59   : > { %2481 = vmatprep.subr.bf16.mxu0 %v2480_v30  ;;  %v2484_v60 = vpack.c.bf16 %v665_v45, %v664_v14  ;;  %v648_v46 = vld [vmem:[%s4176_s1 + $0x30] sm:$0xff]  ;;  %v649_v62 = vld [vmem:[%s4176_s1 + $0x38] sm:$0xff]  ;;  %v2514_v44 = vpack.c.bf16 %v679_v47, %v678_v63  ;;  %v666_v29 = vld [vmem:[%s4176_s1 + $0xc0] sm:$0xff] }
  0x5a   : > { %v696_v15 = vld [vmem:[%s4176_s1 + $0x1b0] sm:$0xff]  ;;  %2511 = vmatpush3.bf16.msra.mxu1 %v2510_v61  ;;  %v697_v12 = vld [vmem:[%s4176_s1 + $0x1b8] sm:$0xff]  ;;  %v667_v61 = vld [vmem:[%s4176_s1 + $0xc8] sm:$0xff]  ;;  %v2486_v63 = vpack.c.bf16 %v649_v62, %v648_v46 }
  0x5b   : > { %v680_v30 = vld [vmem:[%s4176_s1 + $0x130] sm:$0xff]  ;;  %2513 = vmatprep.subr.bf16.mxu1 %v2512_v13  ;;  %v2516_v14 = vpack.c.bf16 %v697_v12, %v696_v15  ;;  %v681_v45 = vld [vmem:[%s4176_s1 + $0x138] sm:$0xff]  ;;  %v698_v47 = vld [vmem:[%s4176_s1 + $0x1c0] sm:$0xff]  ;;  %v2488_v15 = vpack.c.bf16 %v667_v61, %v666_v29 }
  0x5c   : > { %2483 = vmatpush3.bf16.msra.mxu0 %v2482_v31  ;;  %v699_v13 = vld [vmem:[%s4176_s1 + $0x1c8] sm:$0xff]  ;;  %v650_v12 = vld [vmem:[%s4176_s1 + $0x40] sm:$0xff]  ;;  %v2518_v31 = vpack.c.bf16 %v681_v45, %v680_v30  ;;  %v668_v46 = vld [vmem:[%s4176_s1 + $0xd0] sm:$0xff] }
  0x5d   : > { %2485 = vmatprep.subr.bf16.mxu0 %v2484_v60  ;;  %v651_v28 = vld [vmem:[%s4176_s1 + $0x48] sm:$0xff]  ;;  %v669_v62 = vld [vmem:[%s4176_s1 + $0xd8] sm:$0xff]  ;;  %v2520_v29 = vpack.c.bf16 %v699_v13, %v698_v47  ;;  %v682_v60 = vld [vmem:[%s4176_s1 + $0x140] sm:$0xff] }
  0x5e   : > { %2515 = vmatpush3.bf16.msra.mxu1 %v2514_v44  ;;  %v683_v61 = vld [vmem:[%s4176_s1 + $0x148] sm:$0xff]  ;;  %v2490_v44 = vpack.c.bf16 %v651_v28, %v650_v12  ;;  %v700_v30 = vld [vmem:[%s4176_s1 + $0x1d0] sm:$0xff]  ;;  %v701_v45 = vld [vmem:[%s4176_s1 + $0x1d8] sm:$0xff] }
  0x5f   : > { %2517 = vmatprep.subr.bf16.mxu1 %v2516_v14  ;;  %v2492_v14 = vpack.c.bf16 %v669_v62, %v668_v46  ;;  %v652_v47 = vld [vmem:[%s4176_s1 + $0x50] sm:$0xff]  ;;  %v653_v13 = vld [vmem:[%s4176_s1 + $0x58] sm:$0xff]  ;;  %v2522_v28 = vpack.c.bf16 %v683_v61, %v682_v60  ;;  %v2524_v12 = vpack.c.bf16 %v701_v45, %v700_v30  ;;  %v702_v60 = vld [vmem:[%s4176_s1 + $0x1e0] sm:$0xff] }
  0x60   : > { %2487 = vmatpush3.bf16.msra.mxu0 %v2486_v63  ;;  %v670_v63 = vld [vmem:[%s4176_s1 + $0xe0] sm:$0xff]  ;;  %v684_v46 = vld [vmem:[%s4176_s1 + $0x150] sm:$0xff]  ;;  %v2494_v62 = vpack.c.bf16 %v653_v13, %v652_v47  ;;  %v603_v45 = vld [vmem:[%s2943_s12 + $0x8] sm:$0xff] }
  0x61   : > { %2489 = vmatprep.subr.bf16.mxu0 %v2488_v15  ;;  %v671_v15 = vld [vmem:[%s4176_s1 + $0xe8] sm:$0xff]  ;;  %v654_v30 = vld [vmem:[%s4176_s1 + $0x60] sm:$0xff]  ;;  %v672_v13 = vld [vmem:[%s4176_s1 + $0xf0] sm:$0xff]  ;;  %841 = vmatprep.mubr.f32.mxu0 %v603_v45 }
  0x62   : > { %2519 = vmatpush3.bf16.msra.mxu1 %v2518_v31  ;;  %v685_v31 = vld [vmem:[%s4176_s1 + $0x158] sm:$0xff]  ;;  %v2496_v61 = vpack.c.bf16 %v671_v15, %v670_v63  ;;  %v686_v15 = vld [vmem:[%s4176_s1 + $0x160] sm:$0xff]  ;;  %v704_v43 = vld [vmem:[%s4176_s1 + $0x1f0] sm:$0xff] }
  0x63   : > { %2521 = vmatprep.subr.bf16.mxu1 %v2520_v29  ;;  %v703_v29 = vld [vmem:[%s4176_s1 + $0x1e8] sm:$0xff]  ;;  %v2526_v47 = vpack.c.bf16 %v685_v31, %v684_v46  ;;  %v605_v46 = vld [vmem:[%s2943_s12 + $0x18] sm:$0xff]  ;;  %v726_v42 = vld [vmem:[%s4176_s1 + $0x2a0] sm:$0xff] }
  0x64   : > { %2491 = vmatpush3.bf16.msra.mxu0 %v2490_v44  ;;  %v655_v44 = vld [vmem:[%s4176_s1 + $0x68] sm:$0xff]  ;;  %v2528_v63 = vpack.c.bf16 %v703_v29, %v702_v60  ;;  %931 = vmatprep.mubr.f32.mxu1 %v605_v46  ;;  %v656_v29 = vld [vmem:[%s4176_s1 + $0x70] sm:$0xff]  ;;  %v758_v11 = vld [vmem:[%s4176_s1 + $0x3a0] sm:$0xff] }
  0x65   : > { %2493 = vmatprep.subr.bf16.mxu0 %v2492_v14  ;;  %v673_v14 = vld [vmem:[%s4176_s1 + $0xf8] sm:$0xff]  ;;  %v2498_v31 = vpack.c.bf16 %v655_v44, %v654_v30  ;;  %v722_v44 = vld [vmem:[%s4176_s1 + $0x280] sm:$0xff]  ;;  %v723_v45 = vld [vmem:[%s4176_s1 + $0x288] sm:$0xff] }
  0x66   : > { %2523 = vmatpush3.bf16.msra.mxu1 %v2522_v28  ;;  %v687_v28 = vld [vmem:[%s4176_s1 + $0x168] sm:$0xff]  ;;  %v2500_v60 = vpack.c.bf16 %v673_v14, %v672_v13  ;;  %v688_v13 = vld [vmem:[%s4176_s1 + $0x170] sm:$0xff]  ;;  %v689_v14 = vld [vmem:[%s4176_s1 + $0x178] sm:$0xff] }
  0x67   : > { %2525 = vmatprep.subr.bf16.mxu1 %v2524_v12  ;;  %v705_v12 = vld [vmem:[%s4176_s1 + $0x1f8] sm:$0xff]  ;;  %v2530_v30 = vpack.c.bf16 %v687_v28, %v686_v15  ;;  %v754_v15 = vld [vmem:[%s4176_s1 + $0x380] sm:$0xff]  ;;  %v707_v46 = vld [vmem:[%s4176_s1 + $0x208] sm:$0xff] }
  0x68   : > { %2495 = vmatpush3.bf16.msra.mxu0 %v2494_v62  ;;  %v657_v62 = vld [vmem:[%s4176_s1 + $0x78] sm:$0xff]  ;;  %v706_v28 = vld [vmem:[%s4176_s1 + $0x200] sm:$0xff]  ;;  %v748_v10 = vld [vmem:[%s4176_s1 + $0x350] sm:$0xff] }
  0x69   : > { %2497 = vmatprep.subr.bf16.mxu0 %v2496_v61  ;;  %v2532_v61 = vpack.c.bf16 %v705_v12, %v704_v43  ;;  %v2536_v43 = vpack.c.bf16 %v723_v45, %v722_v44  ;;  %v724_v12 = vld [vmem:[%s4176_s1 + $0x290] sm:$0xff]  ;;  %v602_v44 = vld [vmem:[%s2943_s12] sm:$0xff]  ;;  %v2538_v45 = vpack.c.bf16 %v707_v46, %v706_v28 }
  0x6a   : > { %2527 = vmatpush3.bf16.msra.mxu1 %v2526_v47  ;;  %v2502_v47 = vpack.c.bf16 %v657_v62, %v656_v29  ;;  %v738_v62 = vld [vmem:[%s4176_s1 + $0x300] sm:$0xff]  ;;  %v604_v28 = vld [vmem:[%s2943_s12 + $0x10] sm:$0xff] }
  0x6b   : > { %2529 = vmatprep.subr.bf16.mxu1 %v2528_v63  ;;  %v755_v63 = vld [vmem:[%s4176_s1 + $0x388] sm:$0xff] }
  0x6c   : > { %2499 = vmatpush3.bf16.msra.mxu0 %v2498_v31  ;;  %v2534_v31 = vpack.c.bf16 %v689_v14, %v688_v13  ;;  %v2568_v29 = vpack.c.bf16 %v755_v63, %v754_v15  ;;  %v756_v13 = vld [vmem:[%s4176_s1 + $0x390] sm:$0xff]  ;;  %v611_v63 = vld [vmem:[%s2943_s12 + $0x48] sm:$0xff] }
  0x6d   : > { %2501 = vmatprep.subr.bf16.mxu0 %v2500_v60  ;;  %v725_v60 = vld [vmem:[%s4176_s1 + $0x298] sm:$0xff]  ;;  %v708_v15 = vld [vmem:[%s4176_s1 + $0x210] sm:$0xff] }
  0x6e   : > { %2531 = vmatpush3.bf16.msra.mxu1 %v2530_v30  ;;  %v739_v30 = vld [vmem:[%s4176_s1 + $0x308] sm:$0xff]  ;;  %v2540_v14 = vpack.c.bf16 %v725_v60, %v724_v12  ;;  %v740_v60 = vld [vmem:[%s4176_s1 + $0x310] sm:$0xff] }
  0x6f   : > { %2533 = vmatprep.subr.bf16.mxu1 %v2532_v61  ;;  %v757_v61 = vld [vmem:[%s4176_s1 + $0x398] sm:$0xff]  ;;  %v2570_v46 = vpack.c.bf16 %v739_v30, %v738_v62 }
  0x70   : > { %2503 = vmatpush3.bf16.msra.mxu0 %v2502_v47  ;;  %v709_v47 = vld [vmem:[%s4176_s1 + $0x218] sm:$0xff]  ;;  %v2572_v12 = vpack.c.bf16 %v757_v61, %v756_v13  ;;  %v711_v61 = vld [vmem:[%s4176_s1 + $0x228] sm:$0xff] }
  0x71   : > { %2537 = vmatprep.subr.bf16.mxu0 %v2536_v43  ;;  %v727_v43 = vld [vmem:[%s4176_s1 + $0x2a8] sm:$0xff]  ;;  %v613_v62 = vld [vmem:[%s2943_s12 + $0x58] sm:$0xff]  ;;  %v2542_v30 = vpack.c.bf16 %v709_v47, %v708_v15 }
  0x72   : > { %2535 = vmatpush3.bf16.msra.mxu1 %v2534_v31  ;;  %v741_v31 = vld [vmem:[%s4176_s1 + $0x318] sm:$0xff]  ;;  %v2544_v13 = vpack.c.bf16 %v727_v43, %v726_v42  ;;  %v619_v15 = vld [vmem:[%s2943_s12 + $0x88] sm:$0xff]  ;;  %v742_v43 = vld [vmem:[%s4176_s1 + $0x320] sm:$0xff] }
  0x73   : > { %842 = vmatmul.mubr.f32.vlgmr.msra.gmra.mrb[0].mxu0 %v602_v44  ;;  %2569 = vmatprep.subr.bf16.mxu1 %v2568_v29  ;;  %v759_v29 = vld [vmem:[%s4176_s1 + $0x3a8] sm:$0xff]  ;;  %v610_v44 = vld [vmem:[%s2943_s12 + $0x40] sm:$0xff]  ;;  %v2574_v47 = vpack.c.bf16 %v741_v31, %v740_v60  ;;  %v729_v42 = vld [vmem:[%s4176_s1 + $0x2b8] sm:$0xff] }
  0x74   : > { %2539 = vmatpush3.bf16.msra.mxu0 %v2538_v45  ;;  %846 = vmatprep.mubr.f32.mxu0 %v611_v63  ;;  %v710_v45 = vld [vmem:[%s4176_s1 + $0x220] sm:$0xff]  ;;  %v728_v63 = vld [vmem:[%s4176_s1 + $0x2b0] sm:$0xff]  ;;  %v621_v60 = vld [vmem:[%s2943_s12 + $0x98] sm:$0xff] }
  0x75   : > { %932 = vmatmul.mubr.f32.vlgmr.msra.gmra.mrb[0].mxu1 %v604_v28  ;;  %2541 = vmatprep.subr.bf16.mxu0 %v2540_v14  ;;  %v612_v14 = vld [vmem:[%s2943_s12 + $0x50] sm:$0xff]  ;;  %v2576_v28 = vpack.c.bf16 %v759_v29, %v758_v11  ;;  %v2546_v31 = vpack.c.bf16 %v711_v61, %v710_v45  ;;  %v761_v11 = vld [vmem:[%s4176_s1 + $0x3b8] sm:$0xff]  ;;  %v2548_v29 = vpack.c.bf16 %v729_v42, %v728_v63  ;;  %v627_v45 = vld [vmem:[%s2943_s12 + $0xc8] sm:$0xff] }
  0x76   : > { %2571 = vmatpush3.bf16.msra.mxu1 %v2570_v46  ;;  %936 = vmatprep.mubr.f32.mxu1 %v613_v62  ;;  %v743_v46 = vld [vmem:[%s4176_s1 + $0x328] sm:$0xff]  ;;  %v760_v62 = vld [vmem:[%s4176_s1 + $0x3b0] sm:$0xff] }
  0x77   : > { %2573 = vmatprep.subr.bf16.mxu1 %v2572_v12  ;;  %847 = vmatmul.mubr.f32.gmra.mrb[2].mxu0 %v610_v44  ;;  %v618_v12 = vld [vmem:[%s2943_s12 + $0x80] sm:$0xff]  ;;  %v712_v44 = vld [vmem:[%s4176_s1 + $0x230] sm:$0xff]  ;;  %v2578_v61 = vpack.c.bf16 %v743_v46, %v742_v43  ;;  %v2580_v42 = vpack.c.bf16 %v761_v11, %v760_v62  ;;  %v629_v43 = vld [vmem:[%s2943_s12 + $0xd8] sm:$0xff] }
  0x78   : > { %2543 = vmatpush3.bf16.msra.mxu0 %v2542_v30  ;;  %851 = vmatprep.mubr.f32.mxu0 %v619_v15  ;;  %v713_v30 = vld [vmem:[%s4176_s1 + $0x238] sm:$0xff]  ;;  %v730_v15 = vld [vmem:[%s4176_s1 + $0x2c0] sm:$0xff]  ;;  %v620_v63 = vld [vmem:[%s2943_s12 + $0x90] sm:$0xff] }
  0x79   : > { %2545 = vmatprep.subr.bf16.mxu0 %v2544_v13  ;;  %937 = vmatmul.mubr.f32.gmra.mrb[2].mxu1 %v612_v14  ;;  %v731_v13 = vld [vmem:[%s4176_s1 + $0x2c8] sm:$0xff]  ;;  %v744_v14 = vld [vmem:[%s4176_s1 + $0x330] sm:$0xff]  ;;  %v2550_v46 = vpack.c.bf16 %v713_v30, %v712_v44  ;;  %v626_v62 = vld [vmem:[%s2943_s12 + $0xc0] sm:$0xff] }
  0x7a   : > { %2575 = vmatpush3.bf16.msra.mxu1 %v2574_v47  ;;  %941 = vmatprep.mubr.f32.mxu1 %v621_v60  ;;  %v745_v47 = vld [vmem:[%s4176_s1 + $0x338] sm:$0xff]  ;;  %v762_v60 = vld [vmem:[%s4176_s1 + $0x3c0] sm:$0xff]  ;;  %v2552_v11 = vpack.c.bf16 %v731_v13, %v730_v15  ;;  %v635_v44 = vld [vmem:[%s2943_s12 + $0x108] sm:$0xff] }
  0x7b   : > { %2577 = vmatprep.subr.bf16.mxu1 %v2576_v28  ;;  %852 = vmatmul.mubr.f32.gmra.mrb[4].mxu0 %v618_v12  ;;  %v763_v28 = vld [vmem:[%s4176_s1 + $0x3c8] sm:$0xff]  ;;  %v714_v12 = vld [vmem:[%s4176_s1 + $0x240] sm:$0xff]  ;;  %v2582_v30 = vpack.c.bf16 %v745_v47, %v744_v14  ;;  %v628_v15 = vld [vmem:[%s2943_s12 + $0xd0] sm:$0xff] }
  0x7c   : > { %2547 = vmatpush3.bf16.msra.mxu0 %v2546_v31  ;;  %856 = vmatprep.mubr.f32.mxu0 %v627_v45  ;;  %v715_v31 = vld [vmem:[%s4176_s1 + $0x248] sm:$0xff]  ;;  %v732_v45 = vld [vmem:[%s4176_s1 + $0x2d0] sm:$0xff]  ;;  %v2584_v13 = vpack.c.bf16 %v763_v28, %v762_v60  ;;  %v637_v14 = vld [vmem:[%s2943_s12 + $0x118] sm:$0xff] }
  0x7d   : > { %2549 = vmatprep.subr.bf16.mxu0 %v2548_v29  ;;  %942 = vmatmul.mubr.f32.gmra.mrb[4].mxu1 %v620_v63  ;;  %v733_v29 = vld [vmem:[%s4176_s1 + $0x2d8] sm:$0xff]  ;;  %v746_v63 = vld [vmem:[%s4176_s1 + $0x340] sm:$0xff]  ;;  %v2554_v47 = vpack.c.bf16 %v715_v31, %v714_v12  ;;  %v607_v12 = vld [vmem:[%s2943_s12 + $0x28] sm:$0xff] }
  0x7e   : > { %2579 = vmatpush3.bf16.msra.mxu1 %v2578_v61  ;;  %946 = vmatprep.mubr.f32.mxu1 %v629_v43  ;;  %v747_v61 = vld [vmem:[%s4176_s1 + $0x348] sm:$0xff]  ;;  %v764_v43 = vld [vmem:[%s4176_s1 + $0x3d0] sm:$0xff]  ;;  %v634_v60 = vld [vmem:[%s2943_s12 + $0x100] sm:$0xff]  ;;  %v2556_v28 = vpack.c.bf16 %v733_v29, %v732_v45 }
  0x7f   : > { %2581 = vmatprep.subr.bf16.mxu1 %v2580_v42  ;;  %857 = vmatmul.mubr.f32.gmra.mrb[6].mxu0 %v626_v62  ;;  %v765_v42 = vld [vmem:[%s4176_s1 + $0x3d8] sm:$0xff]  ;;  %v716_v62 = vld [vmem:[%s4176_s1 + $0x250] sm:$0xff]  ;;  %v2586_v31 = vpack.c.bf16 %v747_v61, %v746_v63  ;;  %v766_v61 = vld [vmem:[%s4176_s1 + $0x3e0] sm:$0xff] }
  0x80   : > { %2551 = vmatpush3.bf16.msra.mxu0 %v2550_v46  ;;  %861 = vmatprep.mubr.f32.mxu0 %v635_v44  ;;  %v717_v46 = vld [vmem:[%s4176_s1 + $0x258] sm:$0xff]  ;;  %v734_v44 = vld [vmem:[%s4176_s1 + $0x2e0] sm:$0xff]  ;;  %v636_v45 = vld [vmem:[%s2943_s12 + $0x110] sm:$0xff]  ;;  %v2588_v29 = vpack.c.bf16 %v765_v42, %v764_v43 }
  0x81   : > { %2553 = vmatprep.subr.bf16.mxu0 %v2552_v11  ;;  %947 = vmatmul.mubr.f32.gmra.mrb[6].mxu1 %v628_v15  ;;  %v735_v11 = vld [vmem:[%s4176_s1 + $0x2e8] sm:$0xff]  ;;  %v609_v15 = vld [vmem:[%s2943_s12 + $0x38] sm:$0xff]  ;;  %v2558_v63 = vpack.c.bf16 %v717_v46, %v716_v62  ;;  %v718_v43 = vld [vmem:[%s4176_s1 + $0x260] sm:$0xff] }
  0x82   : > { %2583 = vmatpush3.bf16.msra.mxu1 %v2582_v30  ;;  %951 = vmatprep.mubr.f32.mxu1 %v637_v14  ;;  %v749_v30 = vld [vmem:[%s4176_s1 + $0x358] sm:$0xff]  ;;  %v2560_v14 = vpack.c.bf16 %v735_v11, %v734_v44  ;;  %v750_v46 = vld [vmem:[%s4176_s1 + $0x360] sm:$0xff] }
  0x83   : > { %2585 = vmatprep.subr.bf16.mxu1 %v2584_v13  ;;  %862 = vmatmul.mubr.f32.gmra.mrb[8].mxu0 %v634_v60  ;;  %v767_v13 = vld [vmem:[%s4176_s1 + $0x3e8] sm:$0xff]  ;;  %v2590_v42 = vpack.c.bf16 %v749_v30, %v748_v10  ;;  %v736_v60 = vld [vmem:[%s4176_s1 + $0x2f0] sm:$0xff]  ;;  %v769_v44 = vld [vmem:[%s4176_s1 + $0x3f8] sm:$0xff] }
  0x84   : > { %2555 = vmatpush3.bf16.msra.mxu0 %v2554_v47  ;;  %1021 = vmatprep.mubr.f32.mxu0 %v607_v12  ;;  %v719_v47 = vld [vmem:[%s4176_s1 + $0x268] sm:$0xff]  ;;  %v2592_v62 = vpack.c.bf16 %v767_v13, %v766_v61  ;;  %v753_v61 = vld [vmem:[%s4176_s1 + $0x378] sm:$0xff] }
  0x85   : > { %2557 = vmatprep.subr.bf16.mxu0 %v2556_v28  ;;  %952 = vmatmul.mubr.f32.gmra.mrb[8].mxu1 %v636_v45  ;;  %v737_v28 = vld [vmem:[%s4176_s1 + $0x2f8] sm:$0xff]  ;;  %v751_v12 = vld [vmem:[%s4176_s1 + $0x368] sm:$0xff]  ;;  %v2562_v10 = vpack.c.bf16 %v719_v47, %v718_v43  ;;  %v720_v45 = vld [vmem:[%s4176_s1 + $0x270] sm:$0xff] }
  0x86   : > { %2587 = vmatpush3.bf16.msra.mxu1 %v2586_v31  ;;  %1111 = vmatprep.mubr.f32.mxu1 %v609_v15  ;;  %v768_v31 = vld [vmem:[%s4176_s1 + $0x3f0] sm:$0xff]  ;;  %v2564_v11 = vpack.c.bf16 %v737_v28, %v736_v60  ;;  %v2594_v30 = vpack.c.bf16 %v751_v12, %v750_v46  ;;  %v606_v43 = vld [vmem:[%s2943_s12 + $0x20] sm:$0xff]  ;;  %v615_v47 = vld [vmem:[%s2943_s12 + $0x68] sm:$0xff] }
  0x87   : > { %2589 = vmatprep.subr.bf16.mxu1 %v2588_v29  ;;  %v721_v29 = vld [vmem:[%s4176_s1 + $0x278] sm:$0xff]  ;;  %v2596_v15 = vpack.c.bf16 %v769_v44, %v768_v31  ;;  %v614_v28 = vld [vmem:[%s2943_s12 + $0x60] sm:$0xff]  ;;  %v616_v46 = vld [vmem:[%s2943_s12 + $0x70] sm:$0xff] }
  0x88   : > { %2559 = vmatpush3.bf16.msra.mxu0 %v2558_v63  ;;  %v752_v63 = vld [vmem:[%s4176_s1 + $0x370] sm:$0xff]  ;;  %v2566_v13 = vpack.c.bf16 %v721_v29, %v720_v45  ;;  %v617_v60 = vld [vmem:[%s2943_s12 + $0x78] sm:$0xff]  ;;  %v631_v31 = vld [vmem:[%s2943_s12 + $0xe8] sm:$0xff] }
  0x89   : > { %2561 = vmatprep.subr.bf16.mxu0 %v2560_v14  ;;  %v2598_v14 = vpack.c.bf16 %v753_v61, %v752_v63  ;;  %v625_v12 = vld [vmem:[%s2943_s12 + $0xb8] sm:$0xff]  ;;  %v624_v44 = vld [vmem:[%s2943_s12 + $0xb0] sm:$0xff]  ;;  %v630_v45 = vld [vmem:[%s2943_s12 + $0xe0] sm:$0xff] }
  0x8a   : > { %2591 = vmatpush3.bf16.msra.mxu1 %v2590_v42  ;;  %v608_v42 = vld [vmem:[%s2943_s12 + $0x30] sm:$0xff]  ;;  %v639_v29 = vld [vmem:[%s2943_s12 + $0x128] sm:$0xff]  ;;  %v638_v63 = vld [vmem:[%s2943_s12 + $0x120] sm:$0xff] }
  0x8b   : > { %2593 = vmatprep.subr.bf16.mxu1 %v2592_v62  ;;  %v623_v62 = vld [vmem:[%s2943_s12 + $0xa8] sm:$0xff]  ;;  %v640_v61 = vld [vmem:[%s2943_s12 + $0x130] sm:$0xff] }
  0x8c   : > { %2563 = vmatpush3.bf16.msra.mxu0 %v2562_v10  ;;  %v622_v10 = vld [vmem:[%s2943_s12 + $0xa0] sm:$0xff] }
  0x8d   : > { %2565 = vmatprep.subr.bf16.mxu0 %v2564_v11  ;;  %v633_v11 = vld [vmem:[%s2943_s12 + $0xf8] sm:$0xff] }
  0x8e   : > { %2595 = vmatpush3.bf16.msra.mxu1 %v2594_v30  ;;  %v632_v30 = vld [vmem:[%s2943_s12 + $0xf0] sm:$0xff] }
  0x8f   : > { %2597 = vmatprep.subr.bf16.mxu1 %v2596_v15  ;;  %v641_v15 = vld [vmem:[%s2943_s12 + $0x138] sm:$0xff] }
  0x90   : > { %2567 = vmatpush3.bf16.msra.mxu0 %v2566_v13  ;;  %v2781_v13 = vmov 0.0  }
  0x91   : > { %1147 = vst [vmem:[#allocation3] sm:$0xff] %v2781_v13  ;;  %1148 = vst [vmem:[#allocation3 + $0x8] sm:$0xff] %v2781_v13 }
  0x92   : > { %2599 = vmatpush3.bf16.msra.mxu1 %v2598_v14  ;;  %1163 = vst [vmem:[#allocation5] sm:$0xff] %v2781_v13  ;;  %1164 = vst [vmem:[#allocation5 + $0x8] sm:$0xff] %v2781_v13 }
  0x93   : > { %1022 = vmatmul.mubr.f32.vlgmr.msra.gmra.mrb[10].mxu0 %v606_v43  ;;  %1165 = vst [vmem:[#allocation5 + $0x10] sm:$0xff] %v2781_v13  ;;  %1166 = vst [vmem:[#allocation5 + $0x18] sm:$0xff] %v2781_v13  ;;  %v2059_v43 = vld [vmem:[%s4177_s2] ss:$0 sm:$0xff] }
  0x94   : > { %1026 = vmatprep.mubr.f32.mxu0 %v615_v47  ;;  %1167 = vst [vmem:[#allocation5 + $0x20] sm:$0xff] %v2781_v13  ;;  %1168 = vst [vmem:[#allocation5 + $0x28] sm:$0xff] %v2781_v13 }
  0x95   : > { %1112 = vmatmul.mubr.f32.vlgmr.msra.gmra.mrb[10].mxu1 %v608_v42  ;;  %1169 = vst [vmem:[#allocation5 + $0x30] sm:$0xff] %v2781_v13  ;;  %1170 = vst [vmem:[#allocation5 + $0x38] sm:$0xff] %v2781_v13 }
  0x96   : > { %1116 = vmatprep.mubr.f32.mxu1 %v617_v60  ;;  %1171 = vst [vmem:[#allocation5 + $0x40] sm:$0xff] %v2781_v13  ;;  %1172 = vst [vmem:[#allocation5 + $0x48] sm:$0xff] %v2781_v13 }
  0x97   : > { %1027 = vmatmul.mubr.f32.gmra.mrb[12].mxu0 %v614_v28  ;;  %1149 = vst [vmem:[#allocation3 + $0x10] sm:$0xff] %v2781_v13  ;;  %1150 = vst [vmem:[#allocation3 + $0x18] sm:$0xff] %v2781_v13 }
  0x98   : > { %1031 = vmatprep.mubr.f32.mxu0 %v623_v62  ;;  %1151 = vst [vmem:[#allocation3 + $0x20] sm:$0xff] %v2781_v13  ;;  %1152 = vst [vmem:[#allocation3 + $0x28] sm:$0xff] %v2781_v13 }
  0x99   : > { %1117 = vmatmul.mubr.f32.gmra.mrb[12].mxu1 %v616_v46  ;;  %1153 = vst [vmem:[#allocation3 + $0x30] sm:$0xff] %v2781_v13  ;;  %1154 = vst [vmem:[#allocation3 + $0x38] sm:$0xff] %v2781_v13 }
  0x9a   : > { %1121 = vmatprep.mubr.f32.mxu1 %v625_v12  ;;  %1155 = vst [vmem:[#allocation3 + $0x40] sm:$0xff] %v2781_v13  ;;  %1156 = vst [vmem:[#allocation3 + $0x48] sm:$0xff] %v2781_v13 }
  0x9b   : > { %1032 = vmatmul.mubr.f32.gmra.mrb[14].mxu0 %v622_v10  ;;  %1157 = vst [vmem:[#allocation3 + $0x50] sm:$0xff] %v2781_v13  ;;  %1158 = vst [vmem:[#allocation3 + $0x58] sm:$0xff] %v2781_v13 }
  0x9c   : > { %1036 = vmatprep.mubr.f32.mxu0 %v631_v31  ;;  %1159 = vst [vmem:[#allocation3 + $0x60] sm:$0xff] %v2781_v13  ;;  %1160 = vst [vmem:[#allocation3 + $0x68] sm:$0xff] %v2781_v13 }
  0x9d   : > { %1122 = vmatmul.mubr.f32.gmra.mrb[14].mxu1 %v624_v44  ;;  %1161 = vst [vmem:[#allocation3 + $0x70] sm:$0xff] %v2781_v13  ;;  %1162 = vst [vmem:[#allocation3 + $0x78] sm:$0xff] %v2781_v13 }
  0x9e   : > { %1126 = vmatprep.mubr.f32.mxu1 %v633_v11 }
  0x9f   : > { %1037 = vmatmul.mubr.f32.gmra.mrb[16].mxu0 %v630_v45 }
  0xa0   : > { %1041 = vmatprep.mubr.f32.mxu0 %v639_v29 }
  0xa1   : > { %1127 = vmatmul.mubr.f32.gmra.mrb[16].mxu1 %v632_v30 }
  0xa2   : > { %1131 = vmatprep.mubr.f32.mxu1 %v641_v15 }
  0xa3   : > { %1042 = vmatmul.mubr.f32.gmra.mrb[18].mxu0 %v638_v63 }
  0xa5   : > { %1132 = vmatmul.mubr.f32.gmra.mrb[18].mxu1 %v640_v61 }
 0x146   : > { %v2099_v14 = vpop.f32.mrb[0].mxu0 }
 0x147   : > { %v2100_v47 = vpop.f32.mrb[1].mxu0 }
 0x148   : > { %v2101_v42 = vadd.f32 %v2100_v47, %v2099_v14  ;;  %v2146_v60 = vpop.f32.mrb[0].mxu1 }
 0x149   : > { %v2147_v28 = vpop.f32.mrb[1].mxu1 }
 0x14a   : > { %v844_v62 = vadd.f32 %v2101_v42, %v2059_v43  ;;  %v2148_v46 = vadd.f32 %v2147_v28, %v2146_v60  ;;  %v2102_v12 = vpop.f32.mrb[2].mxu0 }
 0x14b   : > { %v2103_v10 = vpop.f32.mrb[3].mxu0 }
 0x14c   : > { %v934_v31 = vadd.f32 %v2148_v46, %v844_v62  ;;  %v2104_v44 = vadd.f32 %v2103_v10, %v2102_v12  ;;  %v2149_v11 = vpop.f32.mrb[2].mxu1 }
 0x14d   : > { %v2150_v45 = vpop.f32.mrb[3].mxu1 }
 0x14e   : > { %v849_v29 = vadd.f32 %v2104_v44, %v2059_v43  ;;  %v2151_v30 = vadd.f32 %v2150_v45, %v2149_v11  ;;  %v2105_v15 = vpop.f32.mrb[4].mxu0 }
 0x14f   : > { %v2106_v63 = vpop.f32.mrb[5].mxu0 }
 0x150   : > { %v939_v61 = vadd.f32 %v2151_v30, %v849_v29  ;;  %v2107_v13 = vadd.f32 %v2106_v63, %v2105_v15  ;;  %v2152_v59 = vpop.f32.mrb[4].mxu1 }
 0x151   : > { %v2153_v58 = vpop.f32.mrb[5].mxu1 }
 0x152   : > { %v854_v27 = vadd.f32 %v2107_v13, %v2059_v43  ;;  %v2154_v14 = vadd.f32 %v2153_v58, %v2152_v59  ;;  %v2108_v47 = vpop.f32.mrb[6].mxu0 }
 0x153   : > { %v2109_v26 = vpop.f32.mrb[7].mxu0 }
 0x154   : > { %v944_v42 = vadd.f32 %v2154_v14, %v854_v27  ;;  %v2110_v60 = vadd.f32 %v2109_v26, %v2108_v47  ;;  %v2155_v28 = vpop.f32.mrb[6].mxu1 }
 0x155   : > { %v2156_v41 = vpop.f32.mrb[7].mxu1 }
 0x156   : > { %v859_v62 = vadd.f32 %v2110_v60, %v2059_v43  ;;  %v2157_v46 = vadd.f32 %v2156_v41, %v2155_v28  ;;  %v2111_v12 = vpop.f32.mrb[8].mxu0 }
 0x157   : > { %v2112_v10 = vpop.f32.mrb[9].mxu0 }
 0x158   : > { %v949_v44 = vadd.f32 %v2157_v46, %v859_v62  ;;  %v2113_v11 = vadd.f32 %v2112_v10, %v2111_v12  ;;  %v2158_v45 = vpop.f32.mrb[8].mxu1 }
 0x159   : > { %v2159_v40 = vpop.f32.mrb[9].mxu1 }
 0x15a   : > { %v864_v29 = vadd.f32 %v2113_v11, %v2059_v43  ;;  %v2160_v30 = vadd.f32 %v2159_v40, %v2158_v45 }
 0x15c   : > { %v954_v15 = vadd.f32 %v2160_v30, %v864_v29 }
 0x166   : > { %v2193_v63 = vpop.f32.mrb[10].mxu0 }
 0x167   : > { %v2194_v13 = vpop.f32.mrb[11].mxu0 }
 0x168   : > { %v2195_v58 = vadd.f32 %v2194_v13, %v2193_v63  ;;  %v2240_v59 = vpop.f32.mrb[10].mxu1 }
 0x169   : > { %v2241_v9 = vpop.f32.mrb[11].mxu1 }
 0x16a   : > { %v1024_v27 = vadd.f32 %v2195_v58, %v934_v31  ;;  %v2242_v26 = vadd.f32 %v2241_v9, %v2240_v59  ;;  %v2196_v14 = vpop.f32.mrb[12].mxu0 }
 0x16b   : > { %v2197_v47 = vpop.f32.mrb[13].mxu0 }
 0x16c   : > { %v1114_v60 = vadd.f32 %v2242_v26, %v1024_v27  ;;  %v2198_v41 = vadd.f32 %v2197_v47, %v2196_v14  ;;  %v2243_v28 = vpop.f32.mrb[12].mxu1 }
 0x16d   : > { %v2244_v8 = vpop.f32.mrb[13].mxu1 }
 0x16e   : > { %v1137_v62 = vmax.f32 %v1114_v60, 0.0  ;;  %v1029_v46 = vadd.f32 %v2198_v41, %v939_v61  ;;  %v2245_v12 = vadd.f32 %v2244_v8, %v2243_v28  ;;  %v2199_v10 = vpop.f32.mrb[14].mxu0 }
 0x16f   : > { %v2200_v43 = vpop.f32.mrb[15].mxu0 }
 0x170   : > { %1142 = vst [vmem:[#allocation2] sm:$0xff] %v1137_v62  ;;  %v1119_v40 = vadd.f32 %v2245_v12, %v1029_v46  ;;  %v2201_v11 = vadd.f32 %v2200_v43, %v2199_v10  ;;  %v2246_v45 = vpop.f32.mrb[14].mxu1 }
 0x171   : > { %v2247_v29 = vpop.f32.mrb[15].mxu1 }
 0x172   : > { %v1138_v30 = vmax.f32 %v1119_v40, 0.0  ;;  %v1034_v63 = vadd.f32 %v2201_v11, %v944_v42  ;;  %v2248_v31 = vadd.f32 %v2247_v29, %v2246_v45  ;;  %v2202_v9 = vpop.f32.mrb[16].mxu0 }
 0x173   : > { %v2203_v13 = vpop.f32.mrb[17].mxu0 }
 0x174   : > { %1143 = vst [vmem:[#allocation2 + $0x8] sm:$0xff] %v1138_v30  ;;  %v1124_v58 = vadd.f32 %v2248_v31, %v1034_v63  ;;  %v2204_v59 = vadd.f32 %v2203_v13, %v2202_v9  ;;  %v2249_v27 = vpop.f32.mrb[16].mxu1 }
 0x175   : > { %v2250_v26 = vpop.f32.mrb[17].mxu1 }
 0x176   : > { %v1139_v14 = vmax.f32 %v1124_v58, 0.0  ;;  %v1039_v61 = vadd.f32 %v2204_v59, %v949_v44  ;;  %v2251_v8 = vadd.f32 %v2250_v26, %v2249_v27  ;;  %v2205_v47 = vpop.f32.mrb[18].mxu0 }
 0x177   : > { %v1173_v60 = vld [vmem:[#allocation2] sm:$0x1f]  ;;  %v2206_v28 = vpop.f32.mrb[19].mxu0 }
 0x178   : > { %v1198_v41 = vld [vmem:[#allocation2 + $0x1] sm:$0x1f]  ;;  %1174 = vst [vmem:[#allocation3] sm:$0x1f] %v1173_v60  ;;  %1144 = vst [vmem:[#allocation2 + $0x10] sm:$0xff] %v1139_v14  ;;  %v1129_v62 = vadd.f32 %v2251_v8, %v1039_v61  ;;  %v2207_v42 = vadd.f32 %v2206_v28, %v2205_v47  ;;  %v2252_v46 = vpop.f32.mrb[18].mxu1 }
 0x179   : > { %1199 = vst [vmem:[#allocation3 + $0x8] sm:$0x1f] %v1198_v41  ;;  %v2253_v12 = vpop.f32.mrb[19].mxu1 }
 0x17a   : > { %v1140_v10 = vmax.f32 %v1129_v62, 0.0  ;;  %v1044_v43 = vadd.f32 %v2207_v42, %v954_v15  ;;  %v2254_v40 = vadd.f32 %v2253_v12, %v2252_v46 }
 0x17b   : > { %v1175_v11 = vld [vmem:[#allocation2 + $0x6] sm:$0x1f] }
 0x17c   : > { %v1200_v45 = vld [vmem:[#allocation2 + $0x7] sm:$0x1f]  ;;  %v1177_v30 = vrot.slane %v1175_v11, 3  ;;  %1145 = vst [vmem:[#allocation2 + $0x18] sm:$0xff] %v1140_v10  ;;  %v1134_v31 = vadd.f32 %v2254_v40, %v1044_v43 }
 0x17d   : > { %v1223_v29 = vld [vmem:[#allocation2 + $0x6] sm:$0x1f]  ;;  %v1202_v44 = vrot.slane %v1200_v45, 3 }
 0x17e   : > { %1224 = vst [vmem:[#allocation3 + $0x10] sm:$0x1f] %v1223_v29  ;;  %v1248_v63 = vld [vmem:[#allocation2 + $0x7] sm:$0x1f]  ;;  %v1141_v9 = vmax.f32 %v1134_v31, 0.0 }
 0x17f   : > { %1249 = vst [vmem:[#allocation3 + $0x18] sm:$0x1f] %v1248_v63  ;;  %1179 = vst [vmem:[#allocation3 + $0x20] ss:$-28 sps:$4 sm:$0xe3] %v1177_v30  }
 0x180   : > { %1204 = vst [vmem:[#allocation3 + $0x28] ss:$-28 sps:$4 sm:$0xe3] %v1202_v44   ;;  %v1181_v13 = vld [vmem:[#allocation2 + $0xc] sm:$0x1f]  ;;  %1146 = vst [vmem:[#allocation2 + $0x20] sm:$0xff] %v1141_v9 }
 0x181   : > { %v1186_v58 = vld [vmem:[#allocation2 + $0x12] sm:$0x1f]  ;;  %v1206_v59 = vld [vmem:[#allocation2 + $0xd] sm:$0x1f]  ;;  %v1183_v27 = vrot.slane %v1181_v13, 6  ;;  %v2600_v13 = vpack.c.bf16 %v2918_v17, %v2913_v16 }
 0x182   : > { %v1188_v26 = vrot.slane %v1186_v58, 1  ;;  %v1208_v15 = vrot.slane %v1206_v59, 6  ;;  %v1211_v14 = vld [vmem:[#allocation2 + $0x13] sm:$0x1f]  ;;  %v1225_v8 = vld [vmem:[#allocation2 + $0xc] sm:$0x1f]  ;;  %v2602_v58 = vpack.c.bf16 %v2838_v1, %v2833_v0  ;;  %v2632_v59 = vpack.c.bf16 %v3088_v49, %v3083_v48 }
 0x183   : > { %v1213_v61 = vrot.slane %v1211_v14, 1  ;;  %v1231_v47 = vld [vmem:[#allocation2 + $0x12] sm:$0x1f]  ;;  %1185 = vst [vmem:[#allocation3 + $0x20] sm:$0x7c] %v1183_v27  ;;  %v1227_v60 = vrot.slane %v1225_v8, 3  ;;  %v2634_v27 = vpack.c.bf16 %v3008_v33, %v3003_v32 }
 0x184   : > { %1190 = vst [vmem:[#allocation3 + $0x40] ss:$-28 sps:$4 sm:$0x8f] %v1188_v26   ;;  %1210 = vst [vmem:[#allocation3 + $0x28] sm:$0x7c] %v1208_v15  ;;  %v1233_v41 = vrot.slane %v1231_v47, 6 }
 0x185   : > { %v1250_v28 = vld [vmem:[#allocation2 + $0xd] sm:$0x1f]  ;;  %v1256_v62 = vld [vmem:[#allocation2 + $0x13] sm:$0x1f]  ;;  %v1192_v12 = vld [vmem:[#allocation2 + $0x18] sm:$0x1f] }
 0x186   : > { %1215 = vst [vmem:[#allocation3 + $0x48] ss:$-28 sps:$4 sm:$0x8f] %v1213_v61   ;;  %v1252_v42 = vrot.slane %v1250_v28, 3  ;;  %v1258_v46 = vrot.slane %v1256_v62, 6  ;;  %v1194_v43 = vrot.slane %v1192_v12, 4 }
 0x187   : > { %v1217_v10 = vld [vmem:[#allocation2 + $0x19] sm:$0x1f]  ;;  %1229 = vst [vmem:[#allocation3 + $0x30] ss:$-28 sps:$4 sm:$0xe3] %v1227_v60  }
 0x188   : > { %1235 = vst [vmem:[#allocation3 + $0x30] sm:$0x7c] %v1233_v41  ;;  %v1219_v40 = vrot.slane %v1217_v10, 4  ;;  %v1236_v11 = vld [vmem:[#allocation2 + $0x18] sm:$0x1f] }
 0x189   : > { %v1261_v45 = vld [vmem:[#allocation2 + $0x19] sm:$0x1f]  ;;  %1254 = vst [vmem:[#allocation3 + $0x38] ss:$-28 sps:$4 sm:$0xe3] %v1252_v42   ;;  %v1238_v29 = vrot.slane %v1236_v11, 1 }
 0x18a   : > { %1260 = vst [vmem:[#allocation3 + $0x38] sm:$0x7c] %v1258_v46  ;;  %v1263_v30 = vrot.slane %v1261_v45, 1  ;;  %1196 = vst [vmem:[#allocation3 + $0x60] ss:$-28 sps:$4 sm:$0xf1] %v1194_v43  }
 0x18b   : > { %1221 = vst [vmem:[#allocation3 + $0x68] ss:$-28 sps:$4 sm:$0xf1] %v1219_v40   ;;  %1240 = vst [vmem:[#allocation3 + $0x50] ss:$-28 sps:$4 sm:$0x8f] %v1238_v29  }
 0x18c   : > { %1265 = vst [vmem:[#allocation3 + $0x58] ss:$-28 sps:$4 sm:$0x8f] %v1263_v30   ;;  %v1242_v44 = vld [vmem:[#allocation2 + $0x1e] sm:$0x1f] }
 0x18d   : > { %v1267_v63 = vld [vmem:[#allocation2 + $0x1f] sm:$0x1f]  ;;  %v1244_v31 = vrot.slane %v1242_v44, 4 }
 0x18e   : > { %v1269_v9 = vrot.slane %v1267_v63, 4 }
 0x18f   : > { %1246 = vst [vmem:[#allocation3 + $0x70] ss:$-28 sps:$4 sm:$0xf1] %v1244_v31  }
 0x190   : > { %1271 = vst [vmem:[#allocation3 + $0x78] ss:$-28 sps:$4 sm:$0xf1] %v1269_v9  }
 0x191   : > { %2773 = dma.done.wait [#allocation8], 8192 }
 0x192   : > { %2774 = vsyncadd [#allocation8], 4294959104  ;;  %v2604_v26 = vpack.c.bf16 %v2933_v19, %v2928_v18  ;;  %v2636_v15 = vpack.c.bf16 %v3098_v51, %v3093_v50  ;;  %2601 = vmatprep.subr.bf16.mxu0 %v2600_v13  ;;  %2633 = vmatprep.subr.bf16.mxu1 %v2632_v59  ;;  %v2606_v0 = vpack.c.bf16 %v2848_v3, %v2843_v2  ;;  %v1277_v2 = vld [vmem:[#allocation3 + $0x8] sm:$0xff]  ;;  %v1279_v3 = vld [vmem:[#allocation3 + $0x18] sm:$0xff] }
 0x193   : > { %2603 = vmatpush3.bf16.msra.mxu0 %v2602_v58  ;;  %2635 = vmatpush3.bf16.msra.mxu1 %v2634_v27  ;;  %v2638_v1 = vpack.c.bf16 %v3018_v35, %v3013_v34  ;;  %v2608_v16 = vpack.c.bf16 %v2948_v21, %v2938_v20  ;;  %v2640_v17 = vpack.c.bf16 %v3108_v53, %v3103_v52  ;;  %v4292_v33 = vld [vmem:[#allocation14_spill] sm:$0xff]  ;;  %v4293_v35 = vld [vmem:[#allocation27_spill] sm:$0xff]  ;;  %v4298_v48 = vld [vmem:[#allocation36_spill] sm:$0xff] }
 0x194   : > { %2605 = vmatprep.subr.bf16.mxu0 %v2604_v26  ;;  %2637 = vmatprep.subr.bf16.mxu1 %v2636_v15  ;;  %v2610_v18 = vpack.c.bf16 %v2858_v5, %v2853_v4  ;;  %v2642_v19 = vpack.c.bf16 %v3028_v37, %v3023_v36  ;;  %v2612_v32 = vpack.c.bf16 %v2958_v23, %v2953_v22  ;;  %v4291_v23 = vld [vmem:[#allocation13_spill] sm:$0xff]  ;;  %v4294_v36 = vld [vmem:[#allocation28_spill] sm:$0xff]  ;;  %v4302_v52 = vld [vmem:[#allocation30_spill] sm:$0xff] }
 0x195   : > { %v2644_v20 = vpack.c.bf16 %v3118_v55, %v3113_v54  ;;  %1427 = vmatprep.mubr.f32.mxu0 %v1277_v2  ;;  %1512 = vmatprep.mubr.f32.mxu1 %v1279_v3  ;;  %v2614_v4 = vpack.c.bf16 %v2868_v7, %v2863_v6  ;;  %v2646_v5 = vpack.c.bf16 %v3038_v39, %v3033_v38  ;;  %v4295_v6 = vld [vmem:[#allocation21_spill] sm:$0xff]  ;;  %v4296_v7 = vld [vmem:[#allocation22_spill] sm:$0xff]  ;;  %v4297_v39 = vld [vmem:[#allocation35_spill] sm:$0xff] }
 0x196   : > { %v2616_v21 = vpack.c.bf16 %v2968_v25, %v2963_v24  ;;  %v2648_v22 = vpack.c.bf16 %v3128_v57, %v3123_v56  ;;  %v2618_v34 = vpack.c.bf16 %v4292_v33, %v4291_v23  ;;  %v2650_v37 = vpack.c.bf16 %v4294_v36, %v4293_v35  ;;  %v4299_v24 = vld [vmem:[#allocation15_spill] sm:$0xff]  ;;  %v4300_v25 = vld [vmem:[#allocation16_spill] sm:$0xff]  ;;  %v4301_v51 = vld [vmem:[#allocation29_spill] sm:$0xff] }
 0x197   : > { %2607 = vmatpush3.bf16.msra.mxu0 %v2606_v0  ;;  %2639 = vmatpush3.bf16.msra.mxu1 %v2638_v1  ;;  %v2620_v38 = vpack.c.bf16 %v4296_v7, %v4295_v6  ;;  %v2652_v49 = vpack.c.bf16 %v4298_v48, %v4297_v39  ;;  %v2622_v50 = vpack.c.bf16 %v4300_v25, %v4299_v24  ;;  %v4303_v54 = vld [vmem:[#allocation23_spill] sm:$0xff]  ;;  %v4304_v55 = vld [vmem:[#allocation24_spill] sm:$0xff]  ;;  %v4305_v57 = vld [vmem:[#allocation37_spill] sm:$0xff]  ;;  %v1541_v7 = vlaneseq }
 0x198   : > { %2609 = vmatprep.subr.bf16.mxu0 %v2608_v16  ;;  %2641 = vmatprep.subr.bf16.mxu1 %v2640_v17  ;;  %v2654_v53 = vpack.c.bf16 %v4302_v52, %v4301_v51  ;;  %v2624_v56 = vpack.c.bf16 %v4304_v55, %v4303_v54  ;;  %v4306_v14 = vld [vmem:[#allocation38_spill] sm:$0xff]  ;;  %v4307_v8 = vld [vmem:[#allocation17_spill] sm:$0xff]  ;;  %v4309_v41 = vld [vmem:[#allocation31_spill] sm:$0xff] }
 0x199   : > { %v2656_v61 = vpack.c.bf16 %v4306_v14, %v4305_v57  ;;  %v4308_v47 = vld [vmem:[#allocation18_spill] sm:$0xff]  ;;  %v4310_v28 = vld [vmem:[#allocation32_spill] sm:$0xff]  ;;  %v4311_v42 = vld [vmem:[#allocation25_spill] sm:$0xff] }
 0x19a   : > { %v2626_v60 = vpack.c.bf16 %v4308_v47, %v4307_v8  ;;  %v2658_v62 = vpack.c.bf16 %v4310_v28, %v4309_v41  ;;  %v4312_v46 = vld [vmem:[#allocation26_spill] sm:$0xff]  ;;  %v4313_v10 = vld [vmem:[#allocation39_spill] sm:$0xff]  ;;  %v4314_v43 = vld [vmem:[#allocation40_spill] sm:$0xff] }
 0x19b   : > { %2611 = vmatpush3.bf16.msra.mxu0 %v2610_v18  ;;  %2643 = vmatpush3.bf16.msra.mxu1 %v2642_v19  ;;  %v2628_v12 = vpack.c.bf16 %v4312_v46, %v4311_v42  ;;  %v2660_v40 = vpack.c.bf16 %v4314_v43, %v4313_v10  ;;  %v4315_v11 = vld [vmem:[#allocation19_spill] sm:$0xff]  ;;  %v4316_v45 = vld [vmem:[#allocation20_spill] sm:$0xff]  ;;  %v4317_v30 = vld [vmem:[#allocation33_spill] sm:$0xff] }
 0x19c   : > { %2613 = vmatprep.subr.bf16.mxu0 %v2612_v32  ;;  %2645 = vmatprep.subr.bf16.mxu1 %v2644_v20  ;;  %v2630_v29 = vpack.c.bf16 %v4316_v45, %v4315_v11  ;;  %v4318_v44 = vld [vmem:[#allocation34_spill] sm:$0xff]  ;;  %v1276_v31 = vld [vmem:[#allocation3] sm:$0xff]  ;;  %v1278_v9 = vld [vmem:[#allocation3 + $0x10] sm:$0xff] }
 0x19d   : > { %v2662_v63 = vpack.c.bf16 %v4318_v44, %v4317_v30  ;;  %v1281_v13 = vld [vmem:[#allocation3 + $0x28] sm:$0xff]  ;;  %v1283_v58 = vld [vmem:[#allocation3 + $0x38] sm:$0xff]  ;;  %v1280_v59 = vld [vmem:[#allocation3 + $0x20] sm:$0xff] }
 0x19e   : > { %v1282_v27 = vld [vmem:[#allocation3 + $0x30] sm:$0xff]  ;;  %v1285_v26 = vld [vmem:[#allocation3 + $0x48] sm:$0xff]  ;;  %v1287_v15 = vld [vmem:[#allocation3 + $0x58] sm:$0xff] }
 0x19f   : > { %2615 = vmatpush3.bf16.msra.mxu0 %v2614_v4  ;;  %2647 = vmatpush3.bf16.msra.mxu1 %v2646_v5  ;;  %v1284_v0 = vld [vmem:[#allocation3 + $0x40] sm:$0xff]  ;;  %v1286_v1 = vld [vmem:[#allocation3 + $0x50] sm:$0xff]  ;;  %v1289_v16 = vld [vmem:[#allocation3 + $0x68] sm:$0xff] }
 0x1a0   : > { %2617 = vmatprep.subr.bf16.mxu0 %v2616_v21  ;;  %2649 = vmatprep.subr.bf16.mxu1 %v2648_v22  ;;  %v1291_v17 = vld [vmem:[#allocation3 + $0x78] sm:$0xff]  ;;  %v1288_v18 = vld [vmem:[#allocation3 + $0x60] sm:$0xff]  ;;  %v1290_v19 = vld [vmem:[#allocation3 + $0x70] sm:$0xff] }
 0x1a1   : > { %v2060_v32 = vld [vmem:[%s4179_s4] ss:$0 sm:$0xff] }
 0x1a3   : > { %2619 = vmatpush3.bf16.msra.mxu0 %v2618_v34  ;;  %2651 = vmatpush3.bf16.msra.mxu1 %v2650_v37 }
 0x1a4   : > { %2621 = vmatprep.subr.bf16.mxu0 %v2620_v38  ;;  %2653 = vmatprep.subr.bf16.mxu1 %v2652_v49 }
 0x1a7   : > { %2623 = vmatpush3.bf16.msra.mxu0 %v2622_v50  ;;  %2655 = vmatpush3.bf16.msra.mxu1 %v2654_v53  ;;  %v4054_v53 = vand.u32 127, %v1541_v7 }
 0x1a8   : > { %2625 = vmatprep.subr.bf16.mxu0 %v2624_v56  ;;  %2657 = vmatprep.subr.bf16.mxu1 %v2656_v61 }
 0x1a9   : > { %vm1543_vm0 = vcmp.lt.s32.totalorder %v4054_v53, 64 }
 0x1ab   : > { %2627 = vmatpush3.bf16.msra.mxu0 %v2626_v60  ;;  %2659 = vmatpush3.bf16.msra.mxu1 %v2658_v62 }
 0x1ac   : > { %2629 = vmatprep.subr.bf16.mxu0 %v2628_v12  ;;  %2661 = vmatprep.subr.bf16.mxu1 %v2660_v40 }
 0x1af   : > { %2631 = vmatpush3.bf16.msra.mxu0 %v2630_v29  ;;  %2663 = vmatpush3.bf16.msra.mxu1 %v2662_v63 }
 0x1b2   : > { %1428 = vmatmul.mubr.f32.vlgmr.msra.gmra.mrb[20].mxu0 %v1276_v31  ;;  %1513 = vmatmul.mubr.f32.vlgmr.msra.gmra.mrb[20].mxu1 %v1278_v9 }
 0x1b3   : > { %1432 = vmatprep.mubr.f32.mxu0 %v1281_v13  ;;  %1517 = vmatprep.mubr.f32.mxu1 %v1283_v58 }
 0x1b6   : > { %1433 = vmatmul.mubr.f32.gmra.mrb[22].mxu0 %v1280_v59  ;;  %1518 = vmatmul.mubr.f32.gmra.mrb[22].mxu1 %v1282_v27 }
 0x1b7   : > { %1437 = vmatprep.mubr.f32.mxu0 %v1285_v26  ;;  %1522 = vmatprep.mubr.f32.mxu1 %v1287_v15 }
 0x1ba   : > { %1438 = vmatmul.mubr.f32.gmra.mrb[24].mxu0 %v1284_v0  ;;  %1523 = vmatmul.mubr.f32.gmra.mrb[24].mxu1 %v1286_v1 }
 0x1bb   : > { %1442 = vmatprep.mubr.f32.mxu0 %v1289_v16  ;;  %1527 = vmatprep.mubr.f32.mxu1 %v1291_v17 }
 0x1be   : > { %1443 = vmatmul.mubr.f32.gmra.mrb[26].mxu0 %v1288_v18  ;;  %1528 = vmatmul.mubr.f32.gmra.mrb[26].mxu1 %v1290_v19 }
 0x285   : > { %v2287_v2 = vpop.f32.mrb[20].mxu0  ;;  %v2331_v3 = vpop.f32.mrb[20].mxu1 }
 0x286   : > { %v2288_v20 = vpop.f32.mrb[21].mxu0  ;;  %v2332_v4 = vpop.f32.mrb[21].mxu1 }
 0x287   : > { %v2289_v5 = vadd.f32 %v2288_v20, %v2287_v2  ;;  %v2333_v21 = vadd.f32 %v2332_v4, %v2331_v3 }
 0x289   : > { %v1430_v22 = vadd.f32 %v2289_v5, %v2060_v32  ;;  %v2290_v23 = vpop.f32.mrb[22].mxu0  ;;  %v2334_v33 = vpop.f32.mrb[22].mxu1 }
 0x28a   : > { %v2291_v34 = vpop.f32.mrb[23].mxu0  ;;  %v2335_v35 = vpop.f32.mrb[23].mxu1 }
 0x28b   : > { %v1515_v36 = vadd.f32 %v2333_v21, %v1430_v22  ;;  %v2292_v37 = vadd.f32 %v2291_v34, %v2290_v23  ;;  %v2336_v6 = vadd.f32 %v2335_v35, %v2334_v33 }
 0x28d   : > { %v1533_v38 = vmax.f32 %v1515_v36, 0.0  ;;  %v1435_v39 = vadd.f32 %v2292_v37, %v2060_v32  ;;  %v2293_v48 = vpop.f32.mrb[24].mxu0  ;;  %v2337_v49 = vpop.f32.mrb[24].mxu1 }
 0x28e   : > { %v2294_v24 = vpop.f32.mrb[25].mxu0  ;;  %v2338_v25 = vpop.f32.mrb[25].mxu1 }
 0x28f   : > { %1537 = vst [vmem:[#allocation4] sm:$0xff] %v1533_v38  ;;  %v1520_v50 = vadd.f32 %v2336_v6, %v1435_v39  ;;  %v2295_v51 = vadd.f32 %v2294_v24, %v2293_v48  ;;  %v2339_v52 = vadd.f32 %v2338_v25, %v2337_v49 }
 0x291   : > { %v1534_v54 = vmax.f32 %v1520_v50, 0.0  ;;  %v1440_v55 = vadd.f32 %v2295_v51, %v2060_v32  ;;  %v2296_v56 = vpop.f32.mrb[26].mxu0  ;;  %v2340_v57 = vpop.f32.mrb[26].mxu1 }
 0x292   : > { %v2297_v14 = vpop.f32.mrb[27].mxu0  ;;  %v2341_v61 = vpop.f32.mrb[27].mxu1 }
 0x293   : > { %1538 = vst [vmem:[#allocation4 + $0x8] sm:$0xff] %v1534_v54  ;;  %v1525_v8 = vadd.f32 %v2339_v52, %v1440_v55  ;;  %v2298_v47 = vadd.f32 %v2297_v14, %v2296_v56  ;;  %v2342_v60 = vadd.f32 %v2341_v61, %v2340_v57  ;;  %v4319_v56 = vld [vmem:[#allocation57_spill] sm:$0xff]  ;;  %v4320_v57 = vld [vmem:[#allocation58_spill] sm:$0xff] }
 0x294   : > { %v2664_v14 = vpack.c.bf16 %v4320_v57, %v4319_v56  ;;  %v4321_v61 = vld [vmem:[#allocation41_spill] sm:$0xff] }
 0x295   : > { %v1535_v41 = vmax.f32 %v1525_v8, 0.0  ;;  %v1445_v28 = vadd.f32 %v2298_v47, %v2060_v32  ;;  %v4322_v8 = vld [vmem:[#allocation42_spill] sm:$0xff] }
 0x296   : > { %v1544_v62 = vld [vmem:[#allocation4] sm:$0x7]  ;;  %v1549_v10 = vld [vmem:[#allocation4 + $0x5] sm:$0x7]  ;;  %v2666_v47 = vpack.c.bf16 %v4322_v8, %v4321_v61 }
 0x297   : > { %v1545_v42 = vld [vmem:[#allocation4 + $0x1] sm:$0x7]  ;;  %1539 = vst [vmem:[#allocation4 + $0x10] sm:$0xff] %v1535_v41  ;;  %v1530_v43 = vadd.f32 %v2342_v60, %v1445_v28  ;;  %v1563_v11 = vld [vmem:[#allocation4 + $0x5] sm:$0x7]  ;;  %v4323_v60 = vld [vmem:[#allocation89_spill] sm:$0xff] }
 0x298   : > { %v1548_v46 = vld [vmem:[#allocation4 + $0x2] sm:$0x7]  ;;  %v1546_v12 = vsel %vm1543_vm0, %v1544_v62, %v1545_v42  ;;  %v4324_v41 = vld [vmem:[#allocation90_spill] sm:$0xff]  ;;  %v4325_v62 = vld [vmem:[#allocation73_spill] sm:$0xff] }
 0x299   : > { %1547 = vst [vmem:[#allocation5] sm:$0x7] %v1546_v12  ;;  %v1550_v40 = vsel %vm1543_vm0, %v1548_v46, %v1549_v10  ;;  %v1536_v45 = vmax.f32 %v1530_v43, 0.0  ;;  %v2696_v28 = vpack.c.bf16 %v4324_v41, %v4323_v60  ;;  %v4326_v42 = vld [vmem:[#allocation74_spill] sm:$0xff] }
 0x29a   : > { %1551 = vst [vmem:[#allocation5 + $0x8] sm:$0x7] %v1550_v40  ;;  %v1552_v29 = vld [vmem:[#allocation4 + $0x6] sm:$0x7]  ;;  %v1556_v44 = vld [vmem:[#allocation4 + $0xa] sm:$0x7]  ;;  %v2698_v46 = vpack.c.bf16 %v4326_v42, %v4325_v62 }
 0x29b   : > { %v1553_v30 = vld [vmem:[#allocation4 + $0x7] sm:$0x7]  ;;  %v1557_v31 = vld [vmem:[#allocation4 + $0xb] sm:$0x7]  ;;  %1540 = vst [vmem:[#allocation4 + $0x18] sm:$0xff] %v1536_v45 }
 0x29c   : > { %v1554_v63 = vsel %vm1543_vm0, %v1552_v29, %v1553_v30  ;;  %v1560_v9 = vld [vmem:[#allocation4 + $0xc] sm:$0x7]  ;;  %v1564_v13 = vld [vmem:[#allocation4 + $0x6] sm:$0x7]  ;;  %v1558_v58 = vsel %vm1543_vm0, %v1556_v44, %v1557_v31 }
 0x29d   : > { %1555 = vst [vmem:[#allocation5 + $0x10] sm:$0x7] %v1554_v63  ;;  %v1561_v59 = vsel %vm1543_vm0, %v1560_v9, 0.0  ;;  %v1565_v27 = vsel %vm1543_vm0, %v1563_v11, %v1564_v13  ;;  %v1570_v26 = vld [vmem:[#allocation4 + $0x7] sm:$0x7] }
 0x29e   : > { %v1571_v15 = vld [vmem:[#allocation4 + $0xa] sm:$0x7]  ;;  %1559 = vst [vmem:[#allocation5 + $0x18] sm:$0x7] %v1558_v58  ;;  %1562 = vst [vmem:[#allocation5 + $0x20] sm:$0x7] %v1561_v59 }
 0x29f   : > { %v1567_v0 = vrot.slane %v1565_v27, 5  ;;  %v1572_v1 = vsel %vm1543_vm0, %v1570_v26, %v1571_v15  ;;  %v1577_v16 = vld [vmem:[#allocation4 + $0xb] sm:$0x7]  ;;  %v1584_v5 = vld [vmem:[#allocation4 + $0xf] sm:$0x7] }
 0x2a0   : > { %v1578_v17 = vld [vmem:[#allocation4 + $0xc] sm:$0x7]  ;;  %v1574_v18 = vrot.slane %v1572_v1, 5  ;;  %v1585_v22 = vld [vmem:[#allocation4 + $0x10] sm:$0x7] }
 0x2a1   : > { %v1579_v19 = vsel %vm1543_vm0, %v1577_v16, %v1578_v17  ;;  %v1597_v2 = vld [vmem:[#allocation4 + $0xa] sm:$0x7]  ;;  %1569 = vst [vmem:[#allocation5] sm:$0x38] %v1567_v0  ;;  %v1591_v23 = vld [vmem:[#allocation4 + $0x11] sm:$0x7]  ;;  %v1586_v33 = vsel %vm1543_vm0, %v1584_v5, %v1585_v22 }
 0x2a2   : > { %v1598_v3 = vld [vmem:[#allocation4 + $0xb] sm:$0x7]  ;;  %v1581_v32 = vrot.slane %v1579_v19, 5  ;;  %1576 = vst [vmem:[#allocation5 + $0x8] sm:$0x38] %v1574_v18  ;;  %v1592_v34 = vsel %vm1543_vm0, %v1591_v23, 0.0 }
 0x2a3   : > { %v1599_v20 = vsel %vm1543_vm0, %v1597_v2, %v1598_v3  ;;  %v1605_v4 = vld [vmem:[#allocation4 + $0xc] sm:$0x7]  ;;  %v1606_v35 = vld [vmem:[#allocation4 + $0xf] sm:$0x7]  ;;  %v1588_v37 = vrot.slane %v1586_v33, 5  ;;  %v1594_v6 = vrot.slane %v1592_v34, 5 }
 0x2a4   : > { %v1601_v21 = vrot.slane %v1599_v20, 2  ;;  %1583 = vst [vmem:[#allocation5 + $0x10] sm:$0x38] %v1581_v32  ;;  %v1613_v36 = vld [vmem:[#allocation4 + $0x10] sm:$0x7]  ;;  %v1607_v7 = vsel %vm1543_vm0, %v1605_v4, %v1606_v35 }
 0x2a5   : > { %v1614_v38 = vld [vmem:[#allocation4 + $0x11] sm:$0x7]  ;;  %v1621_v39 = vld [vmem:[#allocation4 + $0x14] sm:$0x7]  ;;  %v1609_v48 = vrot.slane %v1607_v7, 2 }
 0x2a6   : > { %1603 = vst [vmem:[#allocation5 + $0x28] ss:$-36 sps:$4 sm:$0xc1] %v1601_v21   ;;  %v1615_v49 = vsel %vm1543_vm0, %v1613_v36, %v1614_v38  ;;  %v1622_v24 = vld [vmem:[#allocation4 + $0x15] sm:$0x7] }
 0x2a7   : > { %v1629_v25 = vld [vmem:[#allocation4 + $0x16] sm:$0x7]  ;;  %1590 = vst [vmem:[#allocation5 + $0x18] sm:$0x38] %v1588_v37  ;;  %1596 = vst [vmem:[#allocation5 + $0x20] sm:$0x38] %v1594_v6  ;;  %v1623_v51 = vsel %vm1543_vm0, %v1621_v39, %v1622_v24 }
 0x2a8   : > { %v1617_v50 = vrot.slane %v1615_v49, 2  ;;  %v1630_v52 = vsel %vm1543_vm0, %v1629_v25, 0.0  ;;  %1611 = vst [vmem:[#allocation5 + $0x30] ss:$-36 sps:$4 sm:$0xc1] %v1609_v48   ;;  %v1625_v54 = vrot.slane %v1623_v51, 2 }
 0x2a9   : > { %v1632_v55 = vrot.slane %v1630_v52, 2 }
 0x2aa   : > { %1619 = vst [vmem:[#allocation5 + $0x38] ss:$-36 sps:$4 sm:$0xc1] %v1617_v50   ;;  %1627 = vst [vmem:[#allocation5 + $0x40] ss:$-36 sps:$4 sm:$0xc1] %v1625_v54  }
 0x2ab   : > { %1634 = vst [vmem:[#allocation5 + $0x48] ss:$-36 sps:$4 sm:$0xc1] %v1632_v55  }
 0x2ac   : > { %2775 = dma.done.wait [#allocation8 + $0x1], 10240 }
 0x2ad   : > { %2776 = vsyncadd [#allocation8 + $0x1], 4294957056  ;;  %v4327_v53 = vld [vmem:[#allocation59_spill] sm:$0xff]  ;;  %v4328_v12 = vld [vmem:[#allocation60_spill] sm:$0xff]  ;;  %2665 = vmatprep.subr.bf16.mxu0 %v2664_v14  ;;  %2697 = vmatprep.subr.bf16.mxu1 %v2696_v28 }
 0x2ae   : > { %v2668_v10 = vpack.c.bf16 %v4328_v12, %v4327_v53  ;;  %v4329_v43 = vld [vmem:[#allocation91_spill] sm:$0xff]  ;;  %v4330_v40 = vld [vmem:[#allocation92_spill] sm:$0xff]  ;;  %2667 = vmatpush3.bf16.msra.mxu0 %v2666_v47  ;;  %2699 = vmatpush3.bf16.msra.mxu1 %v2698_v46  ;;  %v4335_v9 = vld [vmem:[#allocation61_spill] sm:$0xff] }
 0x2af   : > { %v2700_v11 = vpack.c.bf16 %v4330_v40, %v4329_v43  ;;  %v4331_v45 = vld [vmem:[#allocation43_spill] sm:$0xff]  ;;  %v4332_v29 = vld [vmem:[#allocation44_spill] sm:$0xff]  ;;  %v4336_v13 = vld [vmem:[#allocation62_spill] sm:$0xff] }
 0x2b0   : > { %v2670_v30 = vpack.c.bf16 %v4332_v29, %v4331_v45  ;;  %v4333_v44 = vld [vmem:[#allocation75_spill] sm:$0xff]  ;;  %v4334_v63 = vld [vmem:[#allocation76_spill] sm:$0xff]  ;;  %2669 = vmatprep.subr.bf16.mxu0 %v2668_v10  ;;  %v2672_v58 = vpack.c.bf16 %v4336_v13, %v4335_v9  ;;  %v4337_v59 = vld [vmem:[#allocation93_spill] sm:$0xff] }
 0x2b1   : > { %v2702_v31 = vpack.c.bf16 %v4334_v63, %v4333_v44  ;;  %2701 = vmatprep.subr.bf16.mxu1 %v2700_v11  ;;  %v4338_v27 = vld [vmem:[#allocation94_spill] sm:$0xff]  ;;  %v4339_v15 = vld [vmem:[#allocation45_spill] sm:$0xff]  ;;  %v1640_v19 = vld [vmem:[#allocation5 + $0x8] sm:$0xff] }
 0x2b2   : > { %v2704_v26 = vpack.c.bf16 %v4338_v27, %v4337_v59  ;;  %2671 = vmatpush3.bf16.msra.mxu0 %v2670_v30  ;;  %v4340_v0 = vld [vmem:[#allocation46_spill] sm:$0xff]  ;;  %v4341_v16 = vld [vmem:[#allocation77_spill] sm:$0xff]  ;;  %v4343_v3 = vld [vmem:[#allocation63_spill] sm:$0xff]  ;;  %1800 = vmatprep.mubr.f32.mxu0 %v1640_v19 }
 0x2b3   : > { %2703 = vmatpush3.bf16.msra.mxu1 %v2702_v31  ;;  %v2674_v1 = vpack.c.bf16 %v4340_v0, %v4339_v15  ;;  %v4342_v17 = vld [vmem:[#allocation78_spill] sm:$0xff]  ;;  %2673 = vmatprep.subr.bf16.mxu0 %v2672_v58  ;;  %v4344_v32 = vld [vmem:[#allocation64_spill] sm:$0xff]  ;;  %v4345_v4 = vld [vmem:[#allocation95_spill] sm:$0xff] }
 0x2b4   : > { %v2706_v18 = vpack.c.bf16 %v4342_v17, %v4341_v16  ;;  %v1642_v2 = vld [vmem:[#allocation5 + $0x18] sm:$0xff]  ;;  %2705 = vmatprep.subr.bf16.mxu1 %v2704_v26  ;;  %v2676_v20 = vpack.c.bf16 %v4344_v32, %v4343_v3  ;;  %v4346_v5 = vld [vmem:[#allocation96_spill] sm:$0xff]  ;;  %v4347_v22 = vld [vmem:[#allocation47_spill] sm:$0xff] }
 0x2b5   : > { %v2708_v21 = vpack.c.bf16 %v4346_v5, %v4345_v4  ;;  %1875 = vmatprep.mubr.f32.mxu1 %v1642_v2  ;;  %v4348_v23 = vld [vmem:[#allocation48_spill] sm:$0xff]  ;;  %v4349_v34 = vld [vmem:[#allocation79_spill] sm:$0xff]  ;;  %v4351_v37 = vld [vmem:[#allocation65_spill] sm:$0xff] }
 0x2b6   : > { %2675 = vmatpush3.bf16.msra.mxu0 %v2674_v1  ;;  %v2678_v33 = vpack.c.bf16 %v4348_v23, %v4347_v22  ;;  %v4350_v35 = vld [vmem:[#allocation80_spill] sm:$0xff]  ;;  %v4352_v6 = vld [vmem:[#allocation66_spill] sm:$0xff]  ;;  %v4353_v38 = vld [vmem:[#allocation97_spill] sm:$0xff] }
 0x2b7   : > { %2707 = vmatpush3.bf16.msra.mxu1 %v2706_v18  ;;  %v2710_v36 = vpack.c.bf16 %v4350_v35, %v4349_v34  ;;  %2677 = vmatprep.subr.bf16.mxu0 %v2676_v20  ;;  %v2680_v7 = vpack.c.bf16 %v4352_v6, %v4351_v37  ;;  %v4354_v39 = vld [vmem:[#allocation98_spill] sm:$0xff]  ;;  %v4355_v49 = vld [vmem:[#allocation49_spill] sm:$0xff]  ;;  %v4359_v54 = vld [vmem:[#allocation67_spill] sm:$0xff] }
 0x2b8   : > { %2709 = vmatprep.subr.bf16.mxu1 %v2708_v21  ;;  %v2712_v48 = vpack.c.bf16 %v4354_v39, %v4353_v38  ;;  %v4356_v24 = vld [vmem:[#allocation50_spill] sm:$0xff]  ;;  %v4357_v50 = vld [vmem:[#allocation81_spill] sm:$0xff]  ;;  %v4360_v55 = vld [vmem:[#allocation68_spill] sm:$0xff] }
 0x2b9   : > { %v2682_v25 = vpack.c.bf16 %v4356_v24, %v4355_v49  ;;  %v4358_v51 = vld [vmem:[#allocation82_spill] sm:$0xff]  ;;  %v2684_v56 = vpack.c.bf16 %v4360_v55, %v4359_v54  ;;  %v4361_v57 = vld [vmem:[#allocation99_spill] sm:$0xff]  ;;  %v4362_v14 = vld [vmem:[#allocation100_spill] sm:$0xff] }
 0x2ba   : > { %2679 = vmatpush3.bf16.msra.mxu0 %v2678_v33  ;;  %v2714_v52 = vpack.c.bf16 %v4358_v51, %v4357_v50  ;;  %v2716_v61 = vpack.c.bf16 %v4362_v14, %v4361_v57  ;;  %v4363_v8 = vld [vmem:[#allocation51_spill] sm:$0xff]  ;;  %v4364_v47 = vld [vmem:[#allocation52_spill] sm:$0xff]  ;;  %v4367_v42 = vld [vmem:[#allocation69_spill] sm:$0xff] }
 0x2bb   : > { %2711 = vmatpush3.bf16.msra.mxu1 %v2710_v36  ;;  %2681 = vmatprep.subr.bf16.mxu0 %v2680_v7  ;;  %v2686_v60 = vpack.c.bf16 %v4364_v47, %v4363_v8  ;;  %v4365_v41 = vld [vmem:[#allocation83_spill] sm:$0xff]  ;;  %v4366_v28 = vld [vmem:[#allocation84_spill] sm:$0xff]  ;;  %v4368_v46 = vld [vmem:[#allocation70_spill] sm:$0xff] }
 0x2bc   : > { %2713 = vmatprep.subr.bf16.mxu1 %v2712_v48  ;;  %v2718_v62 = vpack.c.bf16 %v4366_v28, %v4365_v41  ;;  %v2688_v53 = vpack.c.bf16 %v4368_v46, %v4367_v42  ;;  %v4369_v12 = vld [vmem:[#allocation101_spill] sm:$0xff]  ;;  %v4370_v10 = vld [vmem:[#allocation102_spill] sm:$0xff]  ;;  %v4375_v63 = vld [vmem:[#allocation71_spill] sm:$0xff] }
 0x2bd   : > { %v2720_v43 = vpack.c.bf16 %v4370_v10, %v4369_v12  ;;  %v4371_v40 = vld [vmem:[#allocation53_spill] sm:$0xff]  ;;  %v4372_v11 = vld [vmem:[#allocation54_spill] sm:$0xff]  ;;  %v4376_v31 = vld [vmem:[#allocation72_spill] sm:$0xff] }
 0x2be   : > { %2683 = vmatpush3.bf16.msra.mxu0 %v2682_v25  ;;  %v2690_v45 = vpack.c.bf16 %v4372_v11, %v4371_v40  ;;  %v4373_v29 = vld [vmem:[#allocation85_spill] sm:$0xff]  ;;  %v4374_v30 = vld [vmem:[#allocation86_spill] sm:$0xff]  ;;  %v2692_v9 = vpack.c.bf16 %v4376_v31, %v4375_v63  ;;  %v4377_v13 = vld [vmem:[#allocation103_spill] sm:$0xff] }
 0x2bf   : > { %2715 = vmatpush3.bf16.msra.mxu1 %v2714_v52  ;;  %2685 = vmatprep.subr.bf16.mxu0 %v2684_v56  ;;  %v2722_v44 = vpack.c.bf16 %v4374_v30, %v4373_v29  ;;  %v4378_v58 = vld [vmem:[#allocation104_spill] sm:$0xff]  ;;  %v4379_v27 = vld [vmem:[#allocation55_spill] sm:$0xff]  ;;  %v4383_v17 = vld [vmem:[#allocation105_spill] sm:$0xff] }
 0x2c0   : > { %2717 = vmatprep.subr.bf16.mxu1 %v2716_v61  ;;  %v2724_v59 = vpack.c.bf16 %v4378_v58, %v4377_v13  ;;  %v4380_v26 = vld [vmem:[#allocation56_spill] sm:$0xff]  ;;  %v4381_v0 = vld [vmem:[#allocation87_spill] sm:$0xff]  ;;  %v4384_v18 = vld [vmem:[#allocation106_spill] sm:$0xff] }
 0x2c1   : > { %v2694_v15 = vpack.c.bf16 %v4380_v26, %v4379_v27  ;;  %v4382_v1 = vld [vmem:[#allocation88_spill] sm:$0xff]  ;;  %v2728_v19 = vpack.c.bf16 %v4384_v18, %v4383_v17  ;;  %v1639_v2 = vld [vmem:[#allocation5] sm:$0xff]  ;;  %v1641_v3 = vld [vmem:[#allocation5 + $0x10] sm:$0xff] }
 0x2c2   : > { %2687 = vmatpush3.bf16.msra.mxu0 %v2686_v60  ;;  %v2726_v16 = vpack.c.bf16 %v4382_v1, %v4381_v0  ;;  %v4385_v32 = vld [vmem:[#allocation107_spill] sm:$0xff]  ;;  %v4386_v20 = vld [vmem:[#allocation108_spill] sm:$0xff]  ;;  %v1645_v5 = vld [vmem:[#allocation5 + $0x30] sm:$0xff] }
 0x2c3   : > { %2719 = vmatpush3.bf16.msra.mxu1 %v2718_v62  ;;  %2689 = vmatprep.subr.bf16.mxu0 %v2688_v53  ;;  %v2732_v4 = vpack.c.bf16 %v4386_v20, %v4385_v32  ;;  %v1647_v21 = vld [vmem:[#allocation5 + $0x40] sm:$0xff]  ;;  %v1644_v22 = vld [vmem:[#allocation5 + $0x28] sm:$0xff]  ;;  %v1646_v23 = vld [vmem:[#allocation5 + $0x38] sm:$0xff] }
 0x2c4   : > { %2721 = vmatprep.subr.bf16.mxu1 %v2720_v43  ;;  %v4387_v33 = vld [vmem:[#allocation109_spill] sm:$0xff]  ;;  %v4388_v34 = vld [vmem:[#allocation110_spill] sm:$0xff]  ;;  %v1643_v36 = vld [vmem:[#allocation5 + $0x20] sm:$0xff] }
 0x2c5   : > { %v2736_v35 = vpack.c.bf16 %v4388_v34, %v4387_v33  ;;  %v4389_v37 = vld [vmem:[#allocation111_spill] sm:$0xff]  ;;  %v4390_v6 = vld [vmem:[#allocation112_spill] sm:$0xff]  ;;  %v4391_v38 = vld [vmem:[#allocation113_spill] sm:$0xff] }
 0x2c6   : > { %2691 = vmatpush3.bf16.msra.mxu0 %v2690_v45  ;;  %v2740_v7 = vpack.c.bf16 %v4390_v6, %v4389_v37  ;;  %v4392_v39 = vld [vmem:[#allocation114_spill] sm:$0xff]  ;;  %v4393_v49 = vld [vmem:[#allocation115_spill] sm:$0xff]  ;;  %v4394_v24 = vld [vmem:[#allocation116_spill] sm:$0xff] }
 0x2c7   : > { %2723 = vmatpush3.bf16.msra.mxu1 %v2722_v44  ;;  %2693 = vmatprep.subr.bf16.mxu0 %v2692_v9  ;;  %v2744_v48 = vpack.c.bf16 %v4392_v39, %v4391_v38  ;;  %v2748_v25 = vpack.c.bf16 %v4394_v24, %v4393_v49  ;;  %v4395_v50 = vld [vmem:[#allocation117_spill] sm:$0xff]  ;;  %v4396_v51 = vld [vmem:[#allocation118_spill] sm:$0xff]  ;;  %v4397_v54 = vld [vmem:[#allocation119_spill] sm:$0xff] }
 0x2c8   : > { %2725 = vmatprep.subr.bf16.mxu1 %v2724_v59  ;;  %v2752_v52 = vpack.c.bf16 %v4396_v51, %v4395_v50  ;;  %v4398_v55 = vld [vmem:[#allocation120_spill] sm:$0xff]  ;;  %v2061_v8 = vld [vmem:[%s4181_s6] ss:$0 sm:$0xff] }
 0x2c9   : > { %v2756_v56 = vpack.c.bf16 %v4398_v55, %v4397_v54  ;;  %v1648_v57 = vld [vmem:[#allocation5 + $0x48] sm:$0xff] }
 0x2ca   : > { %2695 = vmatpush3.bf16.msra.mxu0 %v2694_v15 }
 0x2cb   : > { %2727 = vmatpush3.bf16.msra.mxu1 %v2726_v16  ;;  %2729 = vmatprep.subr.bf16.mxu0 %v2728_v19 }
 0x2cd   : > { %1801 = vmatmul.mubr.f32.vlgmr.msra.gmra.mrb[28].mxu0 %v1639_v2 }
 0x2ce   : > { %1876 = vmatmul.mubr.f32.vlgmr.msra.gmra.mrb[28].mxu1 %v1641_v3  ;;  %2731 = vmatpush3.bf16.msra.mxu0 %v2728_v19 }
 0x2cf   : > { %1805 = vmatprep.mubr.f32.mxu0 %v1645_v5  ;;  %2733 = vmatprep.subr.bf16.mxu0 %v2732_v4 }
 0x2d0   : > { %1880 = vmatprep.mubr.f32.mxu1 %v1647_v21 }
 0x2d1   : > { %1806 = vmatmul.mubr.f32.gmra.mrb[30].mxu0 %v1644_v22 }
 0x2d2   : > { %1881 = vmatmul.mubr.f32.gmra.mrb[30].mxu1 %v1646_v23  ;;  %2735 = vmatpush3.bf16.msra.mxu0 %v2732_v4 }
 0x2d3   : > { %2469 = vmatprep.mubr.f32.mxu0 %v1643_v36  ;;  %2737 = vmatprep.subr.bf16.mxu0 %v2736_v35 }
 0x2d6   : > { %2739 = vmatpush3.bf16.msra.mxu0 %v2736_v35 }
 0x2d7   : > { %2741 = vmatprep.subr.bf16.mxu0 %v2740_v7 }
 0x2da   : > { %2743 = vmatpush3.bf16.msra.mxu0 %v2740_v7 }
 0x2db   : > { %2745 = vmatprep.subr.bf16.mxu0 %v2744_v48 }
 0x2de   : > { %2747 = vmatpush3.bf16.msra.mxu0 %v2744_v48 }
 0x2df   : > { %2749 = vmatprep.subr.bf16.mxu0 %v2748_v25 }
 0x2e2   : > { %2751 = vmatpush3.bf16.msra.mxu0 %v2748_v25 }
 0x2e3   : > { %2753 = vmatprep.subr.bf16.mxu0 %v2752_v52 }
 0x2e6   : > { %2755 = vmatpush3.bf16.msra.mxu0 %v2752_v52 }
 0x2e7   : > { %2757 = vmatprep.subr.bf16.mxu0 %v2756_v56 }
 0x2ea   : > { %2759 = vmatpush3.bf16.msra.mxu0 %v2756_v56 }
 0x2ed   : > { %2470 = vmatmul.mubr.f32.vlgmr.msra.gmra.mrb[32].mxu0 %v1648_v57 }
 0x3a0   : > { %v2375_v14 = vpop.f32.mrb[28].mxu0 }
 0x3a1   : > { %v2413_v61 = vpop.f32.mrb[28].mxu1  ;;  %v2376_v47 = vpop.f32.mrb[29].mxu0 }
 0x3a2   : > { %v2414_v60 = vpop.f32.mrb[29].mxu1  ;;  %v2377_v41 = vadd.f32 %v2376_v47, %v2375_v14 }
 0x3a3   : > { %v2415_v28 = vadd.f32 %v2414_v60, %v2413_v61 }
 0x3a4   : > { %v1803_v62 = vadd.f32 %v2377_v41, %v2061_v8  ;;  %v2378_v42 = vpop.f32.mrb[30].mxu0 }
 0x3a5   : > { %v2416_v46 = vpop.f32.mrb[30].mxu1  ;;  %v2379_v53 = vpop.f32.mrb[31].mxu0 }
 0x3a6   : > { %v2417_v12 = vpop.f32.mrb[31].mxu1  ;;  %v2380_v10 = vadd.f32 %v2379_v53, %v2378_v42  ;;  %v1878_v40 = vadd.f32 %v2415_v28, %v1803_v62 }
 0x3a7   : > { %v2418_v43 = vadd.f32 %v2417_v12, %v2416_v46 }
 0x3a8   : > { %v1808_v11 = vadd.f32 %v2380_v10, %v2061_v8 }
 0x3aa   : > { %v1883_v45 = vadd.f32 %v2418_v43, %v1808_v11 }
 0x3c0   : > { %v2471_v29 = vpop.f32.mrb[32].mxu0 }
 0x3c1   : > { %v1958_v30 = vadd.f32 %v2471_v29, %v1883_v45  ;;  %v1952_v44 = vpop.f32.mrb[33].mxu0 }
 0x3c2   : > { %v1953_v63 = vadd.f32 %v1952_v44, %v1878_v40 }
 0x3c3   : > { %v1962_v9 = vmax.f32 %v1958_v30, 0.0 }
 0x3c4   : > { %v1961_v31 = vmax.f32 %v1953_v63, 0.0 }
 0x3c5   : > { %1964 = vst [vmem:[%s2923_s27 + $0x8] sm:$0xff] %v1962_v9 }
 0x3c6   : > { %1963 = vst [vmem:[%s2923_s27] sm:$0xff] %v1961_v31 }
 0x3c7 PF: > { %s17_s24 = sadd.s32 1, %s2779_s24  }
 0x3c8   : > { %p14_p5 = scmp.ge.s32.totalorder %s17_s24, 4  }
 0x3ca   :  { %16 = sbr.rel (!%p14_p5) target bundleno = 1 (0x1), region = 156 }
 0x3d1   :  { %1987 = vsyncmov [#allocation8] }
 0x3d4   :  { %s1988_s20 = vpop.sfrf %1987 }
 0x3d5   :  { %p2064_p6 = scmp.ne.s32.totalorder %s1988_s20, 0 }
 0x3d7   :  { %1992 = shalt.err (%p2064_p6)  }
 0x3d8   :  { %1994 = vsyncmov [#allocation8 + $0x1] }
 0x3db   :  { %s1995_s21 = vpop.sfrf %1994 }
 0x3dc   :  { %p2065_p7 = scmp.ne.s32.totalorder %s1995_s21, 0 }
 0x3de   :  { %1999 = shalt.err (%p2065_p7)  }

</bundles_post_ra>
